<compile_context>
chip_gen: v6e
topology: v6e:2x2x1
jax: 0.10.0
libtpu: 0.0.40
codegen_flags: <defaults>
</compile_context>

<pallas_src>
import functools

import numpy as np
import jax
import jax.numpy as jnp
from jax import lax
from jax.experimental import pallas as pl
from jax.experimental.pallas import tpu as pltpu


def _self_attention_kernel(x_ref, wqkv_ref, bqkv_ref, wo_ref, bo_ref, out_ref,
                           k_vmem, v_vmem, q_vmem,
                           *, inner_dim, seq_len, tq, exp_dtype):
    di = inner_dim

    # Hoisted fused projection: compute K, V, Q (1/scale already folded into the
    # Q weights/bias) ONCE per batch and keep them in VMEM scratch across all
    # query tiles.  Grid axis 1 must be "arbitrary" because of this carry.
    @pl.when(pl.program_id(1) == 0)
    def _project_kvq():
        x = x_ref[0]                                             # (C, L) bf16 (cast in wrapper)
        kvq = jnp.dot(wqkv_ref[...], x,
                      preferred_element_type=jnp.float32) + bqkv_ref[...]
        k_vmem[...] = kvq[0:di].astype(jnp.bfloat16)             # (di, L)
        v_vmem[...] = kvq[di:2 * di].astype(jnp.bfloat16)        # (di, L)
        q_vmem[...] = kvq[2 * di:3 * di].astype(jnp.bfloat16)    # (di, L), pre-scaled

    # Query slice for this tile: lane slice of the scratch (tile-aligned view).
    if tq == seq_len:
        qf = q_vmem[...]
    else:
        q_start = pl.multiple_of(pl.program_id(1) * tq, tq)
        qf = q_vmem[:, pl.ds(q_start, tq)]                       # (di, tq)
    kf = k_vmem[...]                                             # (di, L)
    vf = v_vmem[...]                                             # (di, L)

    # Scores for this query tile against all keys: (tq, L), f32 MXU accumulation.
    # dot_general contracting the feature dims avoids materializing k.T.
    s = lax.dot_general(qf, kf, (((0,), (0,)), ((), ())),
                        preferred_element_type=jnp.float32)

    # Numerically stable softmax along the key axis.  exp runs in bf16 on
    # v6e/v7x when inner_dim is small (EUP bf16 is ~2x rate, p is bf16 anyway);
    # the sum is always accumulated in f32 and 1/denom uses the approx EUP op.
    s_max = jnp.max(s, axis=-1, keepdims=True)
    e = jnp.exp((s - s_max).astype(exp_dtype))
    denom = jnp.sum(e, axis=-1, keepdims=True, dtype=jnp.float32)
    inv = pl.reciprocal(denom, approx=True)
    p = (e * inv.astype(e.dtype)).astype(jnp.bfloat16)           # (tq, L)

    # Context, feature-major: (di, tq) = Vf @ P^T (contract the lane/L dims).
    ctx = lax.dot_general(vf, p, (((1,), (1,)), ((), ())),
                          preferred_element_type=jnp.float32).astype(jnp.bfloat16)

    # Final projection back to C channels: (C, tq), written lane-dense.
    out = jnp.dot(wo_ref[...], ctx,
                  preferred_element_type=jnp.float32) + bo_ref[...]
    out_ref[0] = out.astype(out_ref.dtype)


def _tpu_generation():
    """Best-effort TPU generation detection; None -> conservative defaults."""
    try:
        kind = jax.devices()[0].device_kind.lower()
    except Exception:  # pragma: no cover - CPU/interpret fallback
        return None
    if "v7" in kind or "7x" in kind:
        return "v7"
    if "v6" in kind:
        return "v6"
    if "v5" in kind and ("lite" in kind or "v5e" in kind):
        return "v5e"
    return None


def _pick_query_tile(L, gen):
    # v7x has only 64 MiB VMEM: keep the (tq, L) f32 score tile smaller there.
    if gen == "v7" and L >= 4096:
        candidates = (256, 128)
    else:
        candidates = (512, 256, 128)
    for t in candidates:
        if L % t == 0:
            return t
    return L  # fall back to a single full-length query tile


def _vmem_limit_bytes(gen):
    if gen == "v7":
        return 40 * 1024 * 1024   # 64 MiB physical; leave headroom
    if gen == "v6":
        return 96 * 1024 * 1024   # 128 MiB physical
    if gen == "v5e":
        return 64 * 1024 * 1024   # 128 MiB physical, low default scoped limit
    return 32 * 1024 * 1024       # unknown generation: conservative


def self_attention_pallas(x_cm, params, inner_dim):
    """x_cm: (bs, C, L) float32, channel-major.  Returns (bs, C, L) float32."""
    bs, C, L = x_cm.shape
    wq, bq, wk, bk, wv, bv, wo, bo = params
    di = inner_dim

    # PyTorch: softmax(Q K^T / np.round(np.sqrt(inner_dim), 2)).  Fold 1/scale
    # into the Q projection so the kernel never touches the score matrix twice.
    inv_scale = 1.0 / float(np.round(np.sqrt(inner_dim), 2))

    # Fused [K; V; Q*inv_scale] weights (PyTorch layout (inner, C)), cast to
    # bf16 ONCE outside the kernel.  K/V first so the per-slice offsets are
    # 0 / di / 2*di (pack-aligned when inner_dim % 16 == 0, which it should be).
    wqkv = jnp.concatenate([wk, wv, wq * inv_scale], axis=0).astype(jnp.bfloat16)
    bqkv = jnp.concatenate([bk, bv, bq * inv_scale], axis=0).reshape(3 * di, 1)
    wo_b = wo.astype(jnp.bfloat16)                                      # (C, di)
    bo_c = bo.reshape(C, 1)

    gen = _tpu_generation()
    tq = _pick_query_tile(L, gen)
    nq = L // tq
    # bf16 exp only where the EUP/VPU have a bf16 path (v6e/v7x); f32 on v5e.
    exp_dtype = jnp.bfloat16 if (gen in ("v6", "v7") and di <= 128) else jnp.float32

    # Cast x once in the wrapper: halves the largest double-buffered DMA.
    x_bf16 = x_cm.astype(jnp.bfloat16)

    kernel = functools.partial(_self_attention_kernel, inner_dim=di,
                               seq_len=L, tq=tq, exp_dtype=exp_dtype)

    # Advisory cost hint for XLA's scheduler around the custom call.
    flops = bs * (8 * di * C * L + 4 * di * L * L)
    cost = pl.CostEstimate(
        flops=int(flops),
        transcendentals=int(bs * L * L),
        bytes_accessed=int(bs * C * L * 2          # x (bf16 in)
                           + bs * C * L * 4        # out (f32)
                           + wqkv.size * 2 + wo_b.size * 2
                           + bqkv.size * 4 + bo_c.size * 4))

    return pl.pallas_call(
        kernel,
        out_shape=jax.ShapeDtypeStruct((bs, C, L), jnp.float32),
        grid_spec=pltpu.PrefetchScalarGridSpec(
            num_scalar_prefetch=0,
            grid=(bs, nq),
            in_specs=[
                # x (channel-major, bf16): constant block index along q, so it is
                # only DMA'd once per batch and only read at q == 0.
                pl.BlockSpec((1, C, L), lambda b, q: (b, 0, 0)),
                # Weights/biases: constant index maps -> fetched once, re-used.
                pl.BlockSpec((3 * di, C), lambda b, q: (0, 0)),          # fused [Wk;Wv;Wq/scale] bf16
                pl.BlockSpec((3 * di, 1), lambda b, q: (0, 0)),          # fused biases f32
                pl.BlockSpec((C, di), lambda b, q: (0, 0)),              # Wo bf16
                pl.BlockSpec((C, 1), lambda b, q: (0, 0)),               # bo f32
            ],
            out_specs=pl.BlockSpec((1, C, tq), lambda b, q: (b, 0, q)),
            scratch_shapes=[
                pltpu.VMEM((di, L), jnp.bfloat16),   # K  (per-batch, hoisted)
                pltpu.VMEM((di, L), jnp.bfloat16),   # V
                pltpu.VMEM((di, L), jnp.bfloat16),   # Q  (pre-scaled)
            ],
        ),
        compiler_params=pltpu.CompilerParams(
            # Batch axis stays "parallel" (megacore-shardable on v7x); the query
            # axis carries the K/V/Q scratch so it must be "arbitrary".
            dimension_semantics=("parallel", "arbitrary"),
            vmem_limit_bytes=_vmem_limit_bytes(gen),
        ),
        cost_estimate=cost,
    )(x_bf16, wqkv, bqkv, wo_b, bo_c)


def self_attention_forward(x_nchw, params, inner_dim):
    """Full module forward. x_nchw: (bs, C, H, W) -> same shape (NCHW)."""
    bs, C, H, W = x_nchw.shape
    x_cm = x_nchw.reshape(bs, C, H * W)      # channel-major: only a reshape, no transpose
    out_cm = self_attention_pallas(x_cm, params, inner_dim)
    return out_cm.reshape(bs, C, H, W)


def init_params(key, input_dim, inner_dim):
    """nn.Linear-style init, PyTorch-native layouts:
    wq/wk/wv: (inner_dim, input_dim), wo: (input_dim, inner_dim), biases 1D."""
    keys = jax.random.split(key, 8)
    b_in = 1.0 / np.sqrt(input_dim)
    b_inner = 1.0 / np.sqrt(inner_dim)
    u = lambda k, shape, b: jax.random.uniform(k, shape, jnp.float32, -b, b)
    wq = u(keys[0], (inner_dim, input_dim), b_in)
    bq = u(keys[1], (inner_dim,), b_in)
    wk = u(keys[2], (inner_dim, input_dim), b_in)
    bk = u(keys[3], (inner_dim,), b_in)
    wv = u(keys[4], (inner_dim, input_dim), b_in)
    bv = u(keys[5], (inner_dim,), b_in)
    wo = u(keys[6], (input_dim, inner_dim), b_inner)
    bo = u(keys[7], (input_dim,), b_inner)
    return (wq, bq, wk, bk, wv, bv, wo, bo)


def _reference_forward(x_nchw, params, inner_dim):
    """Pure-JAX f32 reference matching the PyTorch semantics."""
    wq, bq, wk, bk, wv, bv, wo, bo = params
    bs, C, H, W = x_nchw.shape
    L = H * W
    x = x_nchw.reshape(bs, C, L).transpose(0, 2, 1)        # (bs, L, C) token-major
    q = x @ wq.T + bq
    k = x @ wk.T + bk
    v = x @ wv.T + bv
    scale = float(np.round(np.sqrt(inner_dim), 2))
    s = jnp.einsum("bld,bmd->blm", q, k) / scale
    p = jax.nn.softmax(s, axis=-1)
    ctx = jnp.einsum("blm,bmd->bld", p, v)
    out = ctx @ wo.T + bo
    return out.transpose(0, 2, 1).reshape(bs, C, H, W)


if __name__ == "__main__":
    key = jax.random.PRNGKey(0)
    k_x, k_p = jax.random.split(key)

    bs, input_dim, H, W = 2, 4, 16, 16
    inner_dim = 32

    x = jax.random.normal(k_x, (bs, input_dim, H, W), dtype=jnp.float32)
    params = init_params(k_p, input_dim, inner_dim)

    out = self_attention_forward(x, params, inner_dim)
    out = jax.block_until_ready(out)

    ref = _reference_forward(x, params, inner_dim)
    assert out.shape == (bs, input_dim, H, W)
    # bf16 MXU operands / bf16 exp on v6e+ (f32 accumulation) vs the pure-f32
    # reference -> looser tolerance; P rows sum to 1 only to ~1e-3 (approx recip).
    np.testing.assert_allclose(np.asarray(out), np.asarray(ref), rtol=3e-2, atol=3e-2)

    print("KERNEL_OK")
</pallas_src>

<mosaic_0001>
module attributes {stable_mosaic.version = 11 : i64} {
  func.func @_self_attention_kernel(%arg0: i32, %arg1: i32, %arg2: memref<1x4x256xbf16, #tpu.memory_space<vmem>>, %arg3: memref<96x4xbf16, #tpu.memory_space<vmem>>, %arg4: memref<96x1xf32, #tpu.memory_space<vmem>>, %arg5: memref<4x32xbf16, #tpu.memory_space<vmem>>, %arg6: memref<4x1xf32, #tpu.memory_space<vmem>>, %arg7: memref<1x4x256xf32, #tpu.memory_space<vmem>>, %arg8: memref<32x256xbf16, #tpu.memory_space<vmem>>, %arg9: memref<32x256xbf16, #tpu.memory_space<vmem>>, %arg10: memref<32x256xbf16, #tpu.memory_space<vmem>>) attributes {dimension_semantics = [#tpu.dimension_semantics<parallel>, #tpu.dimension_semantics<arbitrary>], iteration_bounds = array<i64: 2, 1>, scalar_prefetch = 0 : i64, scratch_operands = 3 : i64, tpu.core_type = #tpu.core_type<tc>, window_params = [{transform_indices = @transform_0, window_bounds = array<i64: 1, 4, 256>}, {pipeline_mode = #tpu.pipeline_mode<synchronous>, transform_indices = @transform_1, window_bounds = array<i64: 96, 4>}, {pipeline_mode = #tpu.pipeline_mode<synchronous>, transform_indices = @transform_2, window_bounds = array<i64: 96, 1>}, {pipeline_mode = #tpu.pipeline_mode<synchronous>, transform_indices = @transform_3, window_bounds = array<i64: 4, 32>}, {pipeline_mode = #tpu.pipeline_mode<synchronous>, transform_indices = @transform_4, window_bounds = array<i64: 4, 1>}, {transform_indices = @transform_5, window_bounds = array<i64: 1, 4, 256>}]} {
    %c0_i32 = arith.constant 0 : i32
    %0 = arith.cmpi eq, %arg1, %c0_i32 : i32
    %1 = arith.extui %0 : i1 to i32
    %c0_i32_0 = arith.constant 0 : i32
    %2 = arith.cmpi ne, %1, %c0_i32_0 : i32
    scf.if %2 {
      %c0_17 = arith.constant 0 : index
      %c0_18 = arith.constant 0 : index
      %c0_19 = arith.constant 0 : index
      %28 = vector.load %arg2[%c0_17, %c0_18, %c0_19] : memref<1x4x256xbf16, #tpu.memory_space<vmem>>, vector<1x4x256xbf16>
      %29 = vector.shape_cast %28 : vector<1x4x256xbf16> to vector<4x256xbf16>
      %c0_20 = arith.constant 0 : index
      %c0_21 = arith.constant 0 : index
      %30 = vector.load %arg3[%c0_20, %c0_21] : memref<96x4xbf16, #tpu.memory_space<vmem>>, vector<96x4xbf16>
      %cst_22 = arith.constant dense<0.000000e+00> : vector<96x256xf32>
      %31 = tpu.matmul %30, %29, %cst_22 {dimension_numbers = #tpu.dot_dimension_numbers<[1], [0], [0], [1], [0, 0, 1, 1], [], []>} : vector<96x4xbf16>, vector<4x256xbf16>, vector<96x256xf32> -> vector<96x256xf32>
      %c0_23 = arith.constant 0 : index
      %c0_24 = arith.constant 0 : index
      %32 = vector.load %arg4[%c0_23, %c0_24] : memref<96x1xf32, #tpu.memory_space<vmem>>, vector<96x1xf32>
      %33 = vector.broadcast %32 : vector<96x1xf32> to vector<96x256xf32>
      %34 = arith.addf %31, %33 : vector<96x256xf32>
      %35 = vector.extract_strided_slice %34 {offsets = [0, 0], sizes = [32, 256], strides = [1, 1]} : vector<96x256xf32> to vector<32x256xf32>
      %36 = arith.truncf %35 : vector<32x256xf32> to vector<32x256xbf16>
      %c0_25 = arith.constant 0 : index
      %c0_26 = arith.constant 0 : index
      %37 = vector.load %arg8[%c0_25, %c0_26] : memref<32x256xbf16, #tpu.memory_space<vmem>>, vector<32x256xbf16>
      tpu.vector_store %arg8[%c0_25, %c0_26], %36 {strides = array<i32>} : memref<32x256xbf16, #tpu.memory_space<vmem>>, vector<32x256xbf16>,
      %38 = vector.extract_strided_slice %34 {offsets = [32, 0], sizes = [32, 256], strides = [1, 1]} : vector<96x256xf32> to vector<32x256xf32>
      %39 = arith.truncf %38 : vector<32x256xf32> to vector<32x256xbf16>
      %c0_27 = arith.constant 0 : index
      %c0_28 = arith.constant 0 : index
      %40 = vector.load %arg9[%c0_27, %c0_28] : memref<32x256xbf16, #tpu.memory_space<vmem>>, vector<32x256xbf16>
      tpu.vector_store %arg9[%c0_27, %c0_28], %39 {strides = array<i32>} : memref<32x256xbf16, #tpu.memory_space<vmem>>, vector<32x256xbf16>,
      %41 = vector.extract_strided_slice %34 {offsets = [64, 0], sizes = [32, 256], strides = [1, 1]} : vector<96x256xf32> to vector<32x256xf32>
      %42 = arith.truncf %41 : vector<32x256xf32> to vector<32x256xbf16>
      %c0_29 = arith.constant 0 : index
      %c0_30 = arith.constant 0 : index
      %43 = vector.load %arg10[%c0_29, %c0_30] : memref<32x256xbf16, #tpu.memory_space<vmem>>, vector<32x256xbf16>
      tpu.vector_store %arg10[%c0_29, %c0_30], %42 {strides = array<i32>} : memref<32x256xbf16, #tpu.memory_space<vmem>>, vector<32x256xbf16>,
    } else {
    }
    %c0 = arith.constant 0 : index
    %c0_1 = arith.constant 0 : index
    %3 = vector.load %arg10[%c0, %c0_1] : memref<32x256xbf16, #tpu.memory_space<vmem>>, vector<32x256xbf16>
    %c0_2 = arith.constant 0 : index
    %c0_3 = arith.constant 0 : index
    %4 = vector.load %arg8[%c0_2, %c0_3] : memref<32x256xbf16, #tpu.memory_space<vmem>>, vector<32x256xbf16>
    %c0_4 = arith.constant 0 : index
    %c0_5 = arith.constant 0 : index
    %5 = vector.load %arg9[%c0_4, %c0_5] : memref<32x256xbf16, #tpu.memory_space<vmem>>, vector<32x256xbf16>
    %cst = arith.constant dense<0.000000e+00> : vector<256x256xf32>
    %6 = tpu.matmul %3, %4, %cst {dimension_numbers = #tpu.dot_dimension_numbers<[0], [0], [1], [1], [0, 1, 1, 1], [], []>} : vector<32x256xbf16>, vector<32x256xbf16>, vector<256x256xf32> -> vector<256x256xf32>
    %cst_6 = arith.constant dense<0xFF800000> : vector<256xf32>
    %7 = vector.multi_reduction <maximumf>, %6, %cst_6 [1] : vector<256x256xf32> to vector<256xf32>
    %8 = vector.shape_cast %7 : vector<256xf32> to vector<256x1xf32>
    %9 = vector.broadcast %8 : vector<256x1xf32> to vector<256x256xf32>
    %10 = arith.subf %6, %9 : vector<256x256xf32>
    %11 = math.exp %10 : vector<256x256xf32>
    %cst_7 = arith.constant dense<0.000000e+00> : vector<256xf32>
    %12 = vector.multi_reduction <add>, %11, %cst_7 [1] : vector<256x256xf32> to vector<256xf32>
    %13 = vector.shape_cast %12 : vector<256xf32> to vector<256x1xf32>
    %14 = tpu.reciprocal %13 {approx = true} : vector<256x1xf32> -> vector<256x1xf32>
    %15 = vector.broadcast %14 : vector<256x1xf32> to vector<256x256xf32>
    %16 = arith.mulf %11, %15 : vector<256x256xf32>
    %17 = arith.truncf %16 : vector<256x256xf32> to vector<256x256xbf16>
    %cst_8 = arith.constant dense<0.000000e+00> : vector<32x256xf32>
    %18 = tpu.matmul %5, %17, %cst_8 {dimension_numbers = #tpu.dot_dimension_numbers<[1], [1], [0], [0], [0, 0, 1, 0], [], []>} : vector<32x256xbf16>, vector<256x256xbf16>, vector<32x256xf32> -> vector<32x256xf32>
    %19 = arith.truncf %18 : vector<32x256xf32> to vector<32x256xbf16>
    %c0_9 = arith.constant 0 : index
    %c0_10 = arith.constant 0 : index
    %20 = vector.load %arg5[%c0_9, %c0_10] : memref<4x32xbf16, #tpu.memory_space<vmem>>, vector<4x32xbf16>
    %cst_11 = arith.constant dense<0.000000e+00> : vector<4x256xf32>
    %21 = tpu.matmul %20, %19, %cst_11 {dimension_numbers = #tpu.dot_dimension_numbers<[1], [0], [0], [1], [0, 0, 1, 1], [], []>} : vector<4x32xbf16>, vector<32x256xbf16>, vector<4x256xf32> -> vector<4x256xf32>
    %c0_12 = arith.constant 0 : index
    %c0_13 = arith.constant 0 : index
    %22 = vector.load %arg6[%c0_12, %c0_13] : memref<4x1xf32, #tpu.memory_space<vmem>>, vector<4x1xf32>
    %23 = vector.broadcast %22 : vector<4x1xf32> to vector<4x256xf32>
    %24 = arith.addf %21, %23 : vector<4x256xf32>
    %c0_14 = arith.constant 0 : index
    %c0_15 = arith.constant 0 : index
    %c0_16 = arith.constant 0 : index
    %25 = vector.load %arg7[%c0_14, %c0_15, %c0_16] : memref<1x4x256xf32, #tpu.memory_space<vmem>>, vector<1x4x256xf32>
    %26 = vector.shape_cast %25 : vector<1x4x256xf32> to vector<4x256xf32>
    %27 = vector.shape_cast %24 : vector<4x256xf32> to vector<1x4x256xf32>
    tpu.vector_store %arg7[%c0_14, %c0_15, %c0_16], %27 {strides = array<i32>} : memref<1x4x256xf32, #tpu.memory_space<vmem>>, vector<1x4x256xf32>,
    return
  }
  func.func @transform_0(%arg0: i32, %arg1: i32) -> (i32, i32, i32) {
    %c0_i32 = arith.constant 0 : i32
    %c0_i32_0 = arith.constant 0 : i32
    %c0_i32_1 = arith.constant 0 : i32
    return %arg0, %c0_i32, %c0_i32_0 : i32, i32, i32
  }
  func.func @transform_1(%arg0: i32, %arg1: i32) -> (i32, i32) {
    %c0_i32 = arith.constant 0 : i32
    %c0_i32_0 = arith.constant 0 : i32
    %c0_i32_1 = arith.constant 0 : i32
    return %c0_i32, %c0_i32_0 : i32, i32
  }
  func.func @transform_2(%arg0: i32, %arg1: i32) -> (i32, i32) {
    %c0_i32 = arith.constant 0 : i32
    %c0_i32_0 = arith.constant 0 : i32
    %c0_i32_1 = arith.constant 0 : i32
    return %c0_i32, %c0_i32_0 : i32, i32
  }
  func.func @transform_3(%arg0: i32, %arg1: i32) -> (i32, i32) {
    %c0_i32 = arith.constant 0 : i32
    %c0_i32_0 = arith.constant 0 : i32
    %c0_i32_1 = arith.constant 0 : i32
    return %c0_i32, %c0_i32_0 : i32, i32
  }
  func.func @transform_4(%arg0: i32, %arg1: i32) -> (i32, i32) {
    %c0_i32 = arith.constant 0 : i32
    %c0_i32_0 = arith.constant 0 : i32
    %c0_i32_1 = arith.constant 0 : i32
    return %c0_i32, %c0_i32_0 : i32, i32
  }
  func.func @transform_5(%arg0: i32, %arg1: i32) -> (i32, i32, i32) {
    %c0_i32 = arith.constant 0 : i32
    %c0_i32_0 = arith.constant 0 : i32
    return %arg0, %c0_i32, %arg1 : i32, i32, i32
  }
}

</mosaic_0001>

<bundles_post_ra>
// kernel: tpu_custom_call.1
= control target key start
LH: loop header
LB: loop body
LE: loop exit
PB: predicated region body
PF: predicated region fallthrough
CT: control target
= control target key end

     0   :  { %10 = vsyncpa [#allocation6], 0  ;;  %s2837_s0 = inlined_call_operand.vmem [shape: bf16[2,4,256], index: 0, kind: input, shape index: {}]   ;;  %s2838_s1 = inlined_call_operand.vmem [shape: bf16[96,4], index: 1, kind: input, shape index: {}]   ;;  %s2839_s2 = inlined_call_operand.vmem [shape: f32[96,1], index: 2, kind: input, shape index: {}]   ;;  %s2840_s3 = inlined_call_operand.vmem [shape: bf16[4,32], index: 3, kind: input, shape index: {}]   ;;  %s2841_s4 = inlined_call_operand.vmem [shape: f32[4,1], index: 4, kind: input, shape index: {}]   ;;  %s2842_s5 = inlined_call_operand.hbm [shape: f32[2,4,256], index: 5, kind: output, shape index: {}]  }
   0x1   :  { %12 = vsyncpa [#allocation6 + $0x1], 0  ;;  %s2088_s18 = smov 0   ;;  %s2090_s19 = smov 0  }
   0x2   :  { %s2092_s20 = smov 0   ;;  %s2094_s21 = smov 0  }
   0x3   :  { %s2096_s22 = smov 0   ;;  %s2098_s23 = smov 0  }
   0x4 LB: > { %s1628_s24 = sadd.s32 4294967295, %s2054_s23   ;;  %s1629_s25 = sadd.s32 4294967294, %s2054_s23   ;;  %s2054_s23 = sphi %s2098_s23, %s18_s23   ;;  %s2050_s22 = sphi %s2096_s22, %s2952_s22   ;;  %s2046_s21 = sphi %s2094_s21, %s2951_s21   ;;  %s2042_s20 = sphi %s2092_s20, %s2950_s20   ;;  %s2038_s19 = sphi %s2090_s19, %s2949_s19   ;;  %s2034_s18 = sphi %s2088_s18, %s2948_s18  }
   0x5   : > { %s30_s26 = sadd.s32 1, %s2050_s22  ;;  %s149_s27 = sadd.s32 1, %s2042_s20 }
   0x6   : > { %p32_p0 = scmp.ge.s32.totalorder %s30_s26, 2  ;;  %p159_p1 = scmp.ne.s32.totalorder %s2042_s20, %s2038_s19 }
   0x7   : > { %p160_p2 = scmp.eq.s32.totalorder %s1628_s24, 1  ;;  %p165_p3 = scmp.ne.s32.totalorder %s2038_s19, %s2034_s18 }
   0x8   : > { %s2954_s26 = smov (%p32_p0, %s30_s26), 0  ;;  %p166_p5 = scmp.eq.s32.totalorder %s1629_s25, 1 }
   0x9   : > { %p2128_p4 = por %p160_p2, %p159_p1  ;;  %s144_s29 = ssub.s32 %s2050_s22, %s2954_s26 }
   0xa   : > { %p1632_p6 = scmp.ge.s32.totalorder %s2054_s23, 1  ;;  %p147_p7 = scmp.eq.s32.totalorder %s144_s29, 0 }
   0xb   : > { %p2135_p8 = por %p166_p5, %p165_p3  ;;  %p204_p9 = scmp.lt.s32.totalorder %s2054_s23, 3 }
   0xc   : > { %s2141_s6 = scalar_select %p147_p7, %s2042_s20, %s149_s27  }
   0xd   : > { %p205_p10 = pnand %p1632_p6, %p204_p9 }
   0xf   : > { %208 = sbr.rel (%p205_p10) target bundleno = 1567 (0x61f), region = 40 }
  0x14   : > { %p232_p11 = scmp.lt.s32.totalorder %s2046_s21, 1  ;;  %v2056_v0 = vmov 0   ;;  %vm386_vm0 = vcmask 1041408   ;;  %v264_v2 = vld [vmem:[%s2839_s2 + $0x40] sm:$0xff]  ;;  %v266_v5 = vld [vmem:[%s2839_s2 + $0x50] sm:$0xff]  ;;  %v265_v6 = vld [vmem:[%s2839_s2 + $0x48] sm:$0xff] }
  0x15   : > { %425 = vmatprep.mubr.bf16.mxu0 %v2056_v0  ;;  %1778 = vset.pattern.permute.xlu0 %v2056_v0  ;;  %v1780_v7 = vld [vmem:[%s2838_s1] sm:$0xff]   ;;  %v267_v8 = vld [vmem:[%s2839_s2 + $0x58] sm:$0xff]  ;;  %vm367_vm1 = vcmask 31744   ;;  %v258_v9 = vld [vmem:[%s2839_s2 + $0x10] sm:$0xff]  ;;  %vm654_vm2 = vcmask 261120   ;;  %s1709_s9 = sshll.u32 %s2046_s21, 7 }
  0x16   : > { %s233_s7 = scalar_select %p232_p11, %s2046_s21, 1  ;;  %1779 = vset.pattern.permute.xlu1 %v2056_v0  ;;  %735 = vmatprep.mubr.bf16.mxu1 %v2056_v0  ;;  %v259_v10 = vld [vmem:[%s2839_s2 + $0x18] sm:$0xff]  ;;  %v256_v11 = vld [vmem:[%s2839_s2] sm:$0xff]  ;;  %v1781_v12 = vld [vmem:[%s2838_s1 + $0x8] sm:$0xff]  }
  0x17   : > { %310 = vperm.xlu0 %1778, %v264_v2   ;;  %320 = vperm.xlu1 %1779, %v266_v5   ;;  %v257_v13 = vld [vmem:[%s2839_s2 + $0x8] sm:$0xff]  ;;  %v1782_v14 = vld [vmem:[%s2838_s1 + $0x10] sm:$0xff]   ;;  %v1783_v15 = vld [vmem:[%s2838_s1 + $0x18] sm:$0xff]   ;;  %s2797_s14 = scalar_lea.hbm %s2842_s5, %s1709_s9  ;;  %s2057_s21 = smov [#allocation5]  }
  0x18   : > { %s1696_s8 = sshll.u32 %s233_s7, 2  ;;  %v1784_v16 = vld [vmem:[%s2838_s1 + $0x20] sm:$0xff]   ;;  %v1785_v17 = vld [vmem:[%s2838_s1 + $0x28] sm:$0xff]   ;;  %s229_s7 = sand.u32 1, %s2038_s19  }
  0x19   : > { %s236_s11 = scalar_lea.vmem %s2837_s0, %s1696_s8  ;;  %s1633_s8 = sshll.u32 %s229_s7, 3 }
  0x1a   : > { %v1642_v1 = vld.sshfl [vmem:[%s236_s11] sm:$0x33 pattern:$0x76325410]  ;;  %s231_s10 = scalar_lea.vmem [#allocation5], %s1633_s8  ;;  %s1542_s15 = scalar_lea.sflag [#allocation6], %s229_s7 }
  0x1b   : > { %v366_v3 = vcombine.high %v1642_v1, %v1642_v1  ;;  %v388_v4 = vsel %vm386_vm0, %v1642_v1, 0  ;;  %315 = vperm.xlu0 %1778, %v265_v6   ;;  %325 = vperm.xlu1 %1779, %v267_v8   ;;  %s1558_s11 = sshll.u32 %s231_s10, 4  ;;  %s1982_s17 = sshll.u32 %s2057_s21, 4  ;;  %s1559_s11 = int_to_ptr.vmem [resolvable:$true] %s1558_s11  ;;  %s1983_s17 = int_to_ptr.vmem [resolvable:$false] %s1982_s17 }
  0x1c   : > { %s1978_s16 = scalar_lea.vmem %s1559_s11, 128  ;;  %s1984_s24 = scalar_lea.vmem %s1983_s17, 256 }
  0x1d   : > { %1643 = vmatprep.subr.msk.bf16.mxu0 %vm386_vm0, %v366_v3  ;;  %p1979_p12 = scmp.ne.s32.totalorder %s1559_s11, %s1978_s16  ;;  %p1985_p1 = scmp.lt.s32.totalorder %s1559_s11, %s1983_s17 }
  0x1e   : > { %408 = vmatpush1.bf16.msra.mxu0 %v388_v4  ;;  %p1986_p2 = scmp.lt.s32.totalorder %s1984_s24, %s1978_s16 }
  0x1f   : > { %280 = vperm.xlu0 %1778, %v258_v9   ;;  %285 = vperm.xlu1 %1779, %v259_v10   ;;  %p1980_p13 = pnand %p1979_p12, %p2128_p4 }
  0x20   : > { %p1987_p3 = por %p1986_p2, %p1985_p1 }
  0x21   : > { %1644 = vmatmul.mubr.msk.bf16.vlgmr.msra.gmra.mxu0 %vm367_vm1, %v1780_v7  ;;  %p1981_p0 = pneg %p1980_p13 }
  0x22   : > { %435 = vmatprep.mubr.bf16.mxu0 %v2056_v0 }
  0x23   : > { %270 = vperm.xlu0 %1778, %v256_v11   ;;  %275 = vperm.xlu1 %1779, %v257_v13   ;;  %p1988_p5 = pnand %p1987_p3, %p1981_p0 }
  0x29   : > { %1645 = vmatmul.mubr.msk.bf16.gmra.mxu0 %vm367_vm1, %v1781_v12 }
  0x2a   : > { %445 = vmatprep.mubr.bf16.mxu0 %v2056_v0 }
  0x31   : > { %1646 = vmatmul.mubr.msk.bf16.gmra.mxu0 %vm367_vm1, %v1782_v14 }
  0x32   : > { %455 = vmatprep.mubr.bf16.mxu0 %v2056_v0 }
  0x39   : > { %1647 = vmatmul.mubr.msk.bf16.gmra.mxu0 %vm367_vm1, %v1783_v15 }
  0x3a   : > { %465 = vmatprep.mubr.bf16.mxu0 %v2056_v0 }
  0x41   : > { %1648 = vmatmul.mubr.msk.bf16.gmra.mxu0 %vm367_vm1, %v1784_v16 }
  0x42   : > { %475 = vmatprep.mubr.bf16.mxu0 %v2056_v0 }
  0x49   : > { %1649 = vmatmul.mubr.msk.bf16.gmra.mxu0 %vm367_vm1, %v1785_v17 }
  0x92   : > { %v321_v18 = vpop.permute.xlu1 %320  ;;  %v311_v19 = vpop.permute.xlu0 %310 }
  0x96   : > { %v326_v21 = vpop.permute.xlu1 %325  ;;  %v316_v23 = vpop.permute.xlu0 %315 }
  0x9a   : > { %v286_v26 = vpop.permute.xlu1 %285  ;;  %v281_v28 = vpop.permute.xlu0 %280 }
  0x9e   : > { %v276_v31 = vpop.permute.xlu1 %275  ;;  %v271_v37 = vpop.permute.xlu0 %270 }
  0xe1   : > { %v427_v20 = vpop.f32.mrf.mxu0 }
  0xe2   : > { %v428_v46 = vadd.f32 %v427_v20, %v271_v37 }
  0xe3   : > { %v429_v22 = vpop.f32.mrf.mxu0 }
  0xe4   : > { %v430_v40 = vadd.f32 %v429_v22, %v271_v37 }
  0xe5   : > { %v431_v24 = vpop.f32.mrf.mxu0 }
  0xe6   : > { %v432_v42 = vadd.f32 %v431_v24, %v276_v31 }
  0xe7   : > { %v433_v25 = vpop.f32.mrf.mxu0 }
  0xe8   : > { %v434_v34 = vadd.f32 %v433_v25, %v276_v31  ;;  %v1714_v48 = vpack.c.bf16 %v432_v42, %v428_v46 }
  0xe9   : > { %v437_v27 = vpop.f32.mrf.mxu0 }
  0xea   : > { %v438_v38 = vadd.f32 %v437_v27, %v281_v28  ;;  %v1715_v45 = vpack.c.bf16 %v434_v34, %v430_v40 }
  0xeb   : > { %v439_v29 = vpop.f32.mrf.mxu0 }
  0xec   : > { %v440_v35 = vadd.f32 %v439_v29, %v281_v28 }
  0xed   : > { %v441_v30 = vpop.f32.mrf.mxu0 }
  0xee   : > { %v442_v32 = vadd.f32 %v441_v30, %v286_v26 }
  0xef   : > { %v443_v33 = vpop.f32.mrf.mxu0 }
  0xf0   : > { %v444_v36 = vadd.f32 %v443_v33, %v286_v26  ;;  %v1716_v44 = vpack.c.bf16 %v442_v32, %v438_v38 }
  0xf1   : > { %v2205_v39 = vpop.f32.mrf.mxu0 }
  0xf2   : > { %2874 = vst [vmem:[#allocation8_spill] sm:$0xff] %v2205_v39  ;;  %v1717_v41 = vpack.c.bf16 %v444_v36, %v440_v35 }
  0xf3   : > { %v2207_v43 = vpop.f32.mrf.mxu0 }
  0xf4   : > { %2875 = vst [vmem:[#allocation9_spill] sm:$0xff] %v2207_v43  ;;  %715 = vmatprep.subr.bf16.mxu1 %v1717_v41 }
  0xf5   : > { %v2209_v47 = vpop.f32.mrf.mxu0  ;;  %716 = vmatpush1.bf16.msra.mxu1 %v1716_v44 }
  0xf6   : > { %2876 = vst [vmem:[#allocation10_spill] sm:$0xff] %v2209_v47  ;;  %717 = vmatprep.subr.bf16.mxu1 %v1715_v45 }
  0xf7   : > { %v2211_v49 = vpop.f32.mrf.mxu0 }
  0xf8   : > { %2877 = vst [vmem:[#allocation11_spill] sm:$0xff] %v2211_v49 }
  0xf9   : > { %v2213_v50 = vpop.f32.mrf.mxu0  ;;  %718 = vmatpush1.bf16.msra.mxu1 %v1714_v48 }
  0xfa   : > { %2878 = vst [vmem:[#allocation12_spill] sm:$0xff] %v2213_v50 }
  0xfb   : > { %v2215_v51 = vpop.f32.mrf.mxu0 }
  0xfc   : > { %2879 = vst [vmem:[#allocation13_spill] sm:$0xff] %v2215_v51 }
  0xfd   : > { %v2217_v52 = vpop.f32.mrf.mxu0 }
  0xfe   : > { %2880 = vst [vmem:[#allocation14_spill] sm:$0xff] %v2217_v52 }
  0xff   : > { %v2219_v53 = vpop.f32.mrf.mxu0 }
 0x100   : > { %2881 = vst [vmem:[#allocation15_spill] sm:$0xff] %v2219_v53 }
 0x101   : > { %v467_v54 = vpop.f32.mrf.mxu0 }
 0x102   : > { %v468_v57 = vadd.f32 %v467_v54, %v311_v19 }
 0x103   : > { %v469_v55 = vpop.f32.mrf.mxu0 }
 0x104   : > { %v470_v60 = vadd.f32 %v469_v55, %v311_v19 }
 0x105   : > { %v471_v56 = vpop.f32.mrf.mxu0 }
 0x106   : > { %v472_v58 = vadd.f32 %v471_v56, %v316_v23 }
 0x107   : > { %v473_v59 = vpop.f32.mrf.mxu0 }
 0x108   : > { %v1710_v61 = vpack.c.bf16 %v472_v58, %v468_v57  ;;  %v474_v62 = vadd.f32 %v473_v59, %v316_v23 }
 0x109   : > { %v477_v63 = vpop.f32.mrf.mxu0 }
 0x10a   : > { %v1711_v1 = vpack.c.bf16 %v474_v62, %v470_v60  ;;  %602 = vxpose.xlu0.c.b16.start [1/2] (short) %v1710_v61, 128  ;;  %v478_v4 = vadd.f32 %v477_v63, %v321_v18 }
 0x10b   : > { %v479_v2 = vpop.f32.mrf.mxu0 }
 0x10c   : > { %618 = vxpose.xlu1.c.b16.start [1/2] (short) %v1711_v1, 128  ;;  %v480_v7 = vadd.f32 %v479_v2, %v321_v18 }
 0x10d   : > { %v481_v3 = vpop.f32.mrf.mxu0 }
 0x10e   : > { %v482_v5 = vadd.f32 %v481_v3, %v326_v21 }
 0x10f   : > { %v483_v6 = vpop.f32.mrf.mxu0 }
 0x110   : > { %v1712_v8 = vpack.c.bf16 %v482_v5, %v478_v4  ;;  %v484_v9 = vadd.f32 %v483_v6, %v326_v21 }
 0x112   : > { %v1713_v10 = vpack.c.bf16 %v484_v9, %v480_v7  ;;  %603 = vxpose.xlu0.c.b16.end [2/2] (short) %v1712_v8, 128 }
 0x114   : > { %619 = vxpose.xlu1.c.b16.end [2/2] (short) %v1713_v10, 128 }
 0x170   : > { %v610_v11 = vpop.trf.xlu0 }
 0x171   : > { %1670 = vmatmul.mubr.msk.bf16.vlgmr.msra.gmra.mxu1 %vm654_vm2, %v610_v11 }
 0x172   : > { %745 = vmatprep.mubr.bf16.mxu1 %v2056_v0  ;;  %v626_v19 = vpop.trf.xlu1 }
 0x174   : > { %v611_v12 = vpop.trf.xlu0 }
 0x176   : > { %v627_v20 = vpop.trf.xlu1 }
 0x178   : > { %v612_v13 = vpop.trf.xlu0 }
 0x179   : > { %1671 = vmatmul.mubr.msk.bf16.gmra.mxu1 %vm654_vm2, %v611_v12 }
 0x17a   : > { %755 = vmatprep.mubr.bf16.mxu1 %v2056_v0  ;;  %v628_v21 = vpop.trf.xlu1 }
 0x17c   : > { %v613_v14 = vpop.trf.xlu0 }
 0x17e   : > { %v629_v22 = vpop.trf.xlu1 }
 0x180   : > { %v614_v15 = vpop.trf.xlu0 }
 0x181   : > { %1672 = vmatmul.mubr.msk.bf16.gmra.mxu1 %vm654_vm2, %v612_v13 }
 0x182   : > { %765 = vmatprep.mubr.bf16.mxu1 %v2056_v0  ;;  %v630_v23 = vpop.trf.xlu1 }
 0x184   : > { %v615_v16 = vpop.trf.xlu0 }
 0x186   : > { %v631_v24 = vpop.trf.xlu1 }
 0x188   : > { %v616_v17 = vpop.trf.xlu0 }
 0x189   : > { %1673 = vmatmul.mubr.msk.bf16.gmra.mxu1 %vm654_vm2, %v613_v14 }
 0x18a   : > { %775 = vmatprep.mubr.bf16.mxu1 %v2056_v0  ;;  %v632_v25 = vpop.trf.xlu1 }
 0x18c   : > { %v617_v18 = vpop.trf.xlu0 }
 0x18e   : > { %v633_v26 = vpop.trf.xlu1 }
 0x191   : > { %1674 = vmatmul.mubr.msk.bf16.gmra.mxu1 %vm654_vm2, %v614_v15 }
 0x192   : > { %785 = vmatprep.mubr.bf16.mxu1 %v2056_v0 }
 0x199   : > { %1675 = vmatmul.mubr.msk.bf16.gmra.mxu1 %vm654_vm2, %v615_v16 }
 0x19a   : > { %795 = vmatprep.mubr.bf16.mxu1 %v2056_v0 }
 0x1a1   : > { %1676 = vmatmul.mubr.msk.bf16.gmra.mxu1 %vm654_vm2, %v616_v17 }
 0x1a2   : > { %805 = vmatprep.mubr.bf16.mxu1 %v2056_v0 }
 0x1a9   : > { %1677 = vmatmul.mubr.msk.bf16.gmra.mxu1 %vm654_vm2, %v617_v18 }
 0x1aa   : > { %815 = vmatprep.mubr.bf16.mxu1 %v2056_v0 }
 0x1b1   : > { %1678 = vmatmul.mubr.msk.bf16.gmra.mxu1 %vm654_vm2, %v626_v19 }
 0x1b2   : > { %825 = vmatprep.mubr.bf16.mxu1 %v2056_v0 }
 0x1b9   : > { %1679 = vmatmul.mubr.msk.bf16.gmra.mxu1 %vm654_vm2, %v627_v20 }
 0x1ba   : > { %835 = vmatprep.mubr.bf16.mxu1 %v2056_v0 }
 0x1c1   : > { %1680 = vmatmul.mubr.msk.bf16.gmra.mxu1 %vm654_vm2, %v628_v21 }
 0x1c2   : > { %845 = vmatprep.mubr.bf16.mxu1 %v2056_v0 }
 0x1c9   : > { %1681 = vmatmul.mubr.msk.bf16.gmra.mxu1 %vm654_vm2, %v629_v22 }
 0x1ca   : > { %855 = vmatprep.mubr.bf16.mxu1 %v2056_v0 }
 0x1d1   : > { %1682 = vmatmul.mubr.msk.bf16.gmra.mxu1 %vm654_vm2, %v630_v23 }
 0x1d2   : > { %865 = vmatprep.mubr.bf16.mxu1 %v2056_v0 }
 0x1d9   : > { %1683 = vmatmul.mubr.msk.bf16.gmra.mxu1 %vm654_vm2, %v631_v24 }
 0x1da   : > { %875 = vmatprep.mubr.bf16.mxu1 %v2056_v0 }
 0x1e1   : > { %1684 = vmatmul.mubr.msk.bf16.gmra.mxu1 %vm654_vm2, %v632_v25 }
 0x1e2   : > { %885 = vmatprep.mubr.bf16.mxu1 %v2056_v0 }
 0x1e9   : > { %1685 = vmatmul.mubr.msk.bf16.gmra.mxu1 %vm654_vm2, %v633_v26 }
 0x1ea   : > { %1527 = vmatprep.mubr.bf16.mxu1 %v2056_v0 }
 0x231   : > { %v2253_v27 = vpop.f32.mrf.mxu1 }
 0x233   : > { %v2255_v28 = vpop.f32.mrf.mxu1 }
 0x235   : > { %v2257_v29 = vpop.f32.mrf.mxu1 }
 0x237   : > { %v2259_v30 = vpop.f32.mrf.mxu1 }
 0x239   : > { %v2261_v31 = vpop.f32.mrf.mxu1 }
 0x23b   : > { %v2263_v32 = vpop.f32.mrf.mxu1 }
 0x23c   : > { %v902_v25 = vmax.f32 %v2261_v31, %v2263_v32 }
 0x23d   : > { %v2265_v33 = vpop.f32.mrf.mxu1 }
 0x23f   : > { %v2267_v34 = vpop.f32.mrf.mxu1 }
 0x241   : > { %v2269_v35 = vpop.f32.mrf.mxu1 }
 0x243   : > { %v2271_v36 = vpop.f32.mrf.mxu1 }
 0x244   : > { %v908_v21 = vmax.f32 %v2269_v35, %v2271_v36 }
 0x245   : > { %v2273_v0 = vpop.f32.mrf.mxu1 }
 0x247   : > { %v2275_v37 = vpop.f32.mrf.mxu1 }
 0x248   : > { %v911_v24 = vmax.f32 %v2273_v0, %v2275_v37 }
 0x249   : > { %v2277_v38 = vpop.f32.mrf.mxu1 }
 0x24b   : > { %v2279_v40 = vpop.f32.mrf.mxu1 }
 0x24c   : > { %v914_v17 = vmax.f32 %v2277_v38, %v2279_v40 }
 0x24d   : > { %v2281_v41 = vpop.f32.mrf.mxu1 }
 0x24f   : > { %v2283_v42 = vpop.f32.mrf.mxu1 }
 0x250   : > { %v917_v20 = vmax.f32 %v2281_v41, %v2283_v42 }
 0x251   : > { %v2285_v44 = vpop.f32.mrf.mxu1 }
 0x253   : > { %v2287_v45 = vpop.f32.mrf.mxu1 }
 0x254   : > { %v920_v13 = vmax.f32 %v2285_v44, %v2287_v45 }
 0x255   : > { %v2289_v46 = vpop.f32.mrf.mxu1 }
 0x257   : > { %v2291_v48 = vpop.f32.mrf.mxu1 }
 0x258   : > { %v923_v16 = vmax.f32 %v2289_v46, %v2291_v48 }
 0x259   : > { %v2293_v54 = vpop.f32.mrf.mxu1 }
 0x25b   : > { %v2295_v55 = vpop.f32.mrf.mxu1 }
 0x25c   : > { %v926_v9 = vmax.f32 %v2293_v54, %v2295_v55 }
 0x25d   : > { %v2297_v56 = vpop.f32.mrf.mxu1 }
 0x25f   : > { %v2299_v57 = vpop.f32.mrf.mxu1 }
 0x260   : > { %v929_v12 = vmax.f32 %v2297_v56, %v2299_v57 }
 0x261   : > { %v2301_v58 = vpop.f32.mrf.mxu1 }
 0x263   : > { %v2303_v59 = vpop.f32.mrf.mxu1 }
 0x264   : > { %v932_v4 = vmax.f32 %v2301_v58, %v2303_v59 }
 0x265   : > { %v2305_v60 = vpop.f32.mrf.mxu1 }
 0x267   : > { %v2307_v61 = vpop.f32.mrf.mxu1 }
 0x268   : > { %v935_v8 = vmax.f32 %v2305_v60, %v2307_v61 }
 0x269   : > { %v2309_v62 = vpop.f32.mrf.mxu1 }
 0x26b   : > { %v2311_v63 = vpop.f32.mrf.mxu1 }
 0x26c   : > { %v938_v1 = vmax.f32 %v2309_v62, %v2311_v63 }
 0x26d   : > { %v2315_v2 = vpop.f32.mrf.mxu1 }
 0x26e   : > { %939 = vmax.xlane.f32.xlu0 %v938_v1 }
 0x26f   : > { %v2317_v3 = vpop.f32.mrf.mxu1 }
 0x270   : > { %v941_v5 = vmax.f32 %v2315_v2, %v2317_v3 }
 0x271   : > { %v2323_v6 = vpop.f32.mrf.mxu1 }
 0x272   : > { %2882 = vst [vmem:[#allocation16_spill] sm:$0xff] %v2323_v6  ;;  %933 = vmax.xlane.f32.xlu0 %v932_v4  ;;  %942 = vmax.xlane.f32.xlu1 %v941_v5  ;;  %v905_v4 = vmax.f32 %v2265_v33, %v2267_v34  ;;  %v896_v5 = vmax.f32 %v2253_v27, %v2255_v28 }
 0x273   : > { %v2325_v7 = vpop.f32.mrf.mxu1 }
 0x274   : > { %2883 = vst [vmem:[#allocation17_spill] sm:$0xff] %v2325_v7 }
 0x275   : > { %v2331_v10 = vpop.f32.mrf.mxu1 }
 0x276   : > { %2884 = vst [vmem:[#allocation18_spill] sm:$0xff] %v2331_v10  ;;  %936 = vmax.xlane.f32.xlu0 %v935_v8  ;;  %927 = vmax.xlane.f32.xlu1 %v926_v9 }
 0x277   : > { %v2333_v11 = vpop.f32.mrf.mxu1 }
 0x278   : > { %2885 = vst [vmem:[#allocation19_spill] sm:$0xff] %v2333_v11 }
 0x279   : > { %v2339_v14 = vpop.f32.mrf.mxu1 }
 0x27a   : > { %930 = vmax.xlane.f32.xlu0 %v929_v12  ;;  %921 = vmax.xlane.f32.xlu1 %v920_v13  ;;  %v899_v12 = vmax.f32 %v2257_v29, %v2259_v30 }
 0x27b   : > { %v2341_v15 = vpop.f32.mrf.mxu1 }
 0x27d   : > { %v2347_v18 = vpop.f32.mrf.mxu1 }
 0x27e   : > { %2886 = vst [vmem:[#allocation20_spill] sm:$0xff] %v2347_v18  ;;  %924 = vmax.xlane.f32.xlu0 %v923_v16  ;;  %915 = vmax.xlane.f32.xlu1 %v914_v17 }
 0x27f   : > { %v2349_v19 = vpop.f32.mrf.mxu1 }
 0x281   : > { %v2355_v22 = vpop.f32.mrf.mxu1 }
 0x282   : > { %918 = vmax.xlane.f32.xlu0 %v917_v20  ;;  %909 = vmax.xlane.f32.xlu1 %v908_v21 }
 0x283   : > { %v2357_v23 = vpop.f32.mrf.mxu1 }
 0x285   : > { %v2363_v26 = vpop.f32.mrf.mxu1 }
 0x286   : > { %912 = vmax.xlane.f32.xlu0 %v911_v24  ;;  %903 = vmax.xlane.f32.xlu1 %v902_v25 }
 0x287   : > { %v2365_v1 = vpop.f32.mrf.mxu1 }
 0x289   : > { %v2371_v8 = vpop.f32.mrf.mxu1 }
 0x28a   : > { %906 = vmax.xlane.f32.xlu0 %v905_v4  ;;  %897 = vmax.xlane.f32.xlu1 %v896_v5 }
 0x28b   : > { %v2373_v9 = vpop.f32.mrf.mxu1 }
 0x28d   : > { %v2377_v13 = vpop.f32.mrf.mxu1 }
 0x28e   : > { %900 = vmax.xlane.f32.xlu0 %v899_v12 }
 0x28f   : > { %v2379_v16 = vpop.f32.mrf.mxu1 }
 0x291   : > { %v2381_v17 = vpop.f32.mrf.mxu1 }
 0x293   : > { %v2383_v20 = vpop.f32.mrf.mxu1 }
 0x294   : > { %2887 = vst [vmem:[#allocation21_spill] sm:$0xff] %v2383_v20 }
 0x295   : > { %v2385_v21 = vpop.f32.mrf.mxu1 }
 0x296   : > { %2888 = vst [vmem:[#allocation22_spill] sm:$0xff] %v2385_v21 }
 0x297   : > { %v2387_v24 = vpop.f32.mrf.mxu1 }
 0x298   : > { %2889 = vst [vmem:[#allocation23_spill] sm:$0xff] %v2387_v24 }
 0x299   : > { %v2389_v25 = vpop.f32.mrf.mxu1 }
 0x29a   : > { %2890 = vst [vmem:[#allocation24_spill] sm:$0xff] %v2389_v25 }
 0x29b   : > { %v2391_v4 = vpop.f32.mrf.mxu1 }
 0x29c   : > { %2891 = vst [vmem:[#allocation25_spill] sm:$0xff] %v2391_v4  ;;  %v974_v7 = vmax.f32 %v2389_v25, %v2391_v4 }
 0x29d   : > { %v2393_v5 = vpop.f32.mrf.mxu1 }
 0x29e   : > { %2892 = vst [vmem:[#allocation26_spill] sm:$0xff] %v2393_v5 }
 0x29f   : > { %v2395_v50 = vpop.f32.mrf.mxu1 }
 0x2a0   : > { %2893 = vst [vmem:[#allocation27_spill] sm:$0xff] %v2395_v50 }
 0x2a1   : > { %v2397_v52 = vpop.f32.mrf.mxu1 }
 0x2a3   : > { %v2399_v12 = vpop.f32.mrf.mxu1 }
 0x2a4   : > { %2894 = vst [vmem:[#allocation28_spill] sm:$0xff] %v2399_v12  ;;  %v980_v10 = vmax.f32 %v2397_v52, %v2399_v12  ;;  %v977_v12 = vmax.f32 %v2393_v5, %v2395_v50 }
 0x2a5   : > { %v2401_v51 = vpop.f32.mrf.mxu1 }
 0x2a6   : > { %2895 = vst [vmem:[#allocation29_spill] sm:$0xff] %v2401_v51 }
 0x2a7   : > { %v2403_v39 = vpop.f32.mrf.mxu1 }
 0x2a8   : > { %2896 = vst [vmem:[#allocation30_spill] sm:$0xff] %v2403_v39  ;;  %v983_v18 = vmax.f32 %v2401_v51, %v2403_v39 }
 0x2a9   : > { %v2405_v53 = vpop.f32.mrf.mxu1 }
 0x2ab   : > { %v2407_v47 = vpop.f32.mrf.mxu1 }
 0x2ac   : > { %v986_v49 = vmax.f32 %v2405_v53, %v2407_v47 }
 0x2ad   : > { %v2411_v43 = vpop.f32.mrf.mxu1 }
 0x2ae   : > { %987 = vmax.xlane.f32.xlu1 %v986_v49  ;;  %v968_v49 = vmax.f32 %v2381_v17, %v2383_v20 }
 0x2af   : > { %v2415_v11 = vpop.f32.mrf.mxu1 }
 0x2b0   : > { %v989_v6 = vmax.f32 %v2411_v43, %v2415_v11 }
 0x2b2   : > { %981 = vmax.xlane.f32.xlu1 %v980_v10  ;;  %990 = vmax.xlane.f32.xlu0 %v989_v6  ;;  %v971_v10 = vmax.f32 %v2385_v21, %v2387_v24 }
 0x2b6   : > { %975 = vmax.xlane.f32.xlu1 %v974_v7  ;;  %984 = vmax.xlane.f32.xlu0 %v983_v18 }
 0x2ba   : > { %969 = vmax.xlane.f32.xlu1 %v968_v49  ;;  %978 = vmax.xlane.f32.xlu0 %v977_v12 }
 0x2be   : > { %972 = vmax.xlane.f32.xlu0 %v971_v10 }
 0x2f7   : > { %v940_v6 = vpop.xlane.xlu0 %939 }
 0x2f8   : > { %v1020_v4 = vsub.f32 %v2309_v62, %v940_v6  ;;  %v1021_v25 = vsub.f32 %v2311_v63, %v940_v6 }
 0x2fa   : > { %v1112_v39 = vmul.f32 1.442695, %v1020_v4  ;;  %v1114_v7 = vmul.f32 1.442695, %v1021_v25 }
 0x2fb   : > { %v934_v18 = vpop.xlane.xlu0 %933  ;;  %v943_v51 = vpop.xlane.xlu1 %942 }
 0x2fc   : > { %1786 = vpow2.f32 %v1112_v39  ;;  %v1016_v20 = vsub.f32 %v2301_v58, %v934_v18  ;;  %v1017_v50 = vsub.f32 %v2303_v59, %v934_v18  ;;  %v1022_v12 = vsub.f32 %v2315_v2, %v943_v51 }
 0x2fd   : > { %1788 = vpow2.f32 %v1114_v7  ;;  %v1023_v49 = vsub.f32 %v2317_v3, %v943_v51 }
 0x2fe   : > { %v1104_v10 = vmul.f32 1.442695, %v1016_v20  ;;  %v1106_v24 = vmul.f32 1.442695, %v1017_v50  ;;  %v1116_v21 = vmul.f32 1.442695, %v1022_v12 }
 0x2ff   : > { %v1118_v62 = vmul.f32 1.442695, %v1023_v49  ;;  %v937_v5 = vpop.xlane.xlu0 %936  ;;  %v928_v63 = vpop.xlane.xlu1 %927 }
 0x300   : > { %1790 = vpow2.f32 %v1104_v10  ;;  %v1018_v25 = vsub.f32 %v2305_v60, %v937_v5  ;;  %v1019_v39 = vsub.f32 %v2307_v61, %v937_v5  ;;  %v1012_v58 = vsub.f32 %v2293_v54, %v928_v63 }
 0x301   : > { %1792 = vpow2.f32 %v1106_v24  ;;  %v1013_v59 = vsub.f32 %v2295_v55, %v928_v63 }
 0x302   : > { %1794 = vpow2.f32 %v1116_v21  ;;  %v1108_v3 = vmul.f32 1.442695, %v1018_v25  ;;  %v1110_v50 = vmul.f32 1.442695, %v1019_v39  ;;  %v1096_v20 = vmul.f32 1.442695, %v1012_v58 }
 0x303   : > { %1796 = vpow2.f32 %v1118_v62  ;;  %v931_v2 = vpop.xlane.xlu0 %930  ;;  %v922_v51 = vpop.xlane.xlu1 %921  ;;  %v1098_v4 = vmul.f32 1.442695, %v1013_v59 }
 0x304   : > { %1798 = vpow2.f32 %v1108_v3  ;;  %v1014_v6 = vsub.f32 %v2297_v56, %v931_v2  ;;  %v1015_v60 = vsub.f32 %v2299_v57, %v931_v2  ;;  %v1008_v55 = vsub.f32 %v2285_v44, %v922_v51 }
 0x305   : > { %1800 = vpow2.f32 %v1110_v50  ;;  %v1009_v24 = vsub.f32 %v2287_v45, %v922_v51  ;;  %v962_v44 = vmax.f32 %v2371_v8, %v2373_v9 }
 0x306   : > { %1802 = vpow2.f32 %v1096_v20  ;;  %v1100_v18 = vmul.f32 1.442695, %v1014_v6  ;;  %v1102_v12 = vmul.f32 1.442695, %v1015_v60  ;;  %v1088_v57 = vmul.f32 1.442695, %v1008_v55 }
 0x307   : > { %v925_v61 = vpop.xlane.xlu0 %924  ;;  %v916_v21 = vpop.xlane.xlu1 %915  ;;  %1804 = vpow2.f32 %v1098_v4  ;;  %v1090_v62 = vmul.f32 1.442695, %v1009_v24  ;;  %v965_v6 = vmax.f32 %v2377_v13, %v2379_v16  ;;  %v956_v24 = vmax.f32 %v2355_v22, %v2357_v23 }
 0x308   : > { %1806 = vpow2.f32 %v1100_v18  ;;  %v1010_v39 = vsub.f32 %v2289_v46, %v925_v61  ;;  %v1011_v58 = vsub.f32 %v2291_v48, %v925_v61  ;;  %v1004_v2 = vsub.f32 %v2277_v38, %v916_v21 }
 0x309   : > { %v2440_v7 = vpop.eup %1786  ;;  %1808 = vpow2.f32 %v1102_v12  ;;  %v1005_v51 = vsub.f32 %v2279_v40, %v916_v21 }
 0x30a   : > { %v2443_v54 = vpop.eup %1788  ;;  %1810 = vpow2.f32 %v1088_v57  ;;  %v1092_v50 = vmul.f32 1.442695, %v1010_v39  ;;  %v1094_v46 = vmul.f32 1.442695, %v1011_v58  ;;  %v1080_v38 = vmul.f32 1.442695, %v1004_v2 }
 0x30b   : > { %v1226_v5 = vadd.f32 %v2443_v54, %v2440_v7  ;;  %v919_v63 = vpop.xlane.xlu0 %918  ;;  %v910_v25 = vpop.xlane.xlu1 %909  ;;  %1812 = vpow2.f32 %v1090_v62  ;;  %v1082_v21 = vmul.f32 1.442695, %v1005_v51 }
 0x30c   : > { %v1000_v61 = vsub.f32 %v2269_v35, %v910_v25  ;;  %v1001_v55 = vsub.f32 %v2271_v36, %v910_v25  ;;  %1814 = vpow2.f32 %v1092_v50  ;;  %v1006_v18 = vsub.f32 %v2281_v41, %v919_v63 }
 0x30d   : > { %v2449_v56 = vpop.eup %1790  ;;  %1227 = vadd.xlane.f32.xlu1 %v1226_v5  ;;  %1816 = vpow2.f32 %v1094_v46  ;;  %v1007_v12 = vsub.f32 %v2283_v42, %v919_v63 }
 0x30e   : > { %v2451_v49 = vpop.eup %1792  ;;  %1818 = vpow2.f32 %v1080_v38  ;;  %v1072_v57 = vmul.f32 1.442695, %v1000_v61  ;;  %v1074_v62 = vmul.f32 1.442695, %v1001_v55  ;;  %v1084_v58 = vmul.f32 1.442695, %v1006_v18 }
 0x30f   : > { %v2453_v10 = vpop.eup %1794  ;;  %v1220_v3 = vadd.f32 %v2451_v49, %v2449_v56  ;;  %v913_v4 = vpop.xlane.xlu0 %912  ;;  %1820 = vpow2.f32 %v1082_v21 }
 0x310   : > { %v2457_v45 = vpop.eup %1796  ;;  %v904_v48 = vpop.xlane.xlu1 %903  ;;  %v1002_v42 = vsub.f32 %v2273_v0, %v913_v4  ;;  %v1003_v2 = vsub.f32 %v2275_v37, %v913_v4  ;;  %1822 = vpow2.f32 %v1072_v57  ;;  %v950_v37 = vmax.f32 %v2339_v14, %v2341_v15  ;;  %v2897_v57 = vld [vmem:[#allocation20_spill] sm:$0xff] }
 0x311   : > { %963 = vmax.xlane.f32.xlu1 %v962_v44  ;;  %v1229_v59 = vadd.f32 %v2457_v45, %v2453_v10  ;;  %v2467_v20 = vpop.eup %1798  ;;  %v996_v36 = vsub.f32 %v2261_v31, %v904_v48  ;;  %v997_v25 = vsub.f32 %v2263_v32, %v904_v48  ;;  %v959_v31 = vmax.f32 %v2363_v26, %v2365_v1 }
 0x312   : > { %v2471_v60 = vpop.eup %1800  ;;  %1824 = vpow2.f32 %v1074_v62  ;;  %v1076_v48 = vmul.f32 1.442695, %v1002_v42  ;;  %v1078_v38 = vmul.f32 1.442695, %v1003_v2 }
 0x313   : > { %1230 = vadd.xlane.f32.xlu0 %v1229_v59  ;;  %v2474_v40 = vpop.eup %1802  ;;  %v1223_v35 = vadd.f32 %v2471_v60, %v2467_v20  ;;  %v907_v44 = vpop.xlane.xlu0 %906  ;;  %v1086_v59 = vmul.f32 1.442695, %v1007_v12  ;;  %v1064_v32 = vmul.f32 1.442695, %v996_v36  ;;  %v1066_v46 = vmul.f32 1.442695, %v997_v25 }
 0x314   : > { %v2479_v5 = vpop.eup %1804  ;;  %v898_v39 = vpop.xlane.xlu1 %897  ;;  %1826 = vpow2.f32 %v1084_v58  ;;  %v953_v36 = vmax.f32 %v2897_v57, %v2349_v19 }
 0x315   : > { %1221 = vadd.xlane.f32.xlu1 %v1220_v3  ;;  %v1214_v41 = vadd.f32 %v2479_v5, %v2474_v40  ;;  %v2490_v63 = vpop.eup %1806  ;;  %v992_v3 = vsub.f32 %v2253_v27, %v898_v39  ;;  %v993_v0 = vsub.f32 %v2255_v28, %v898_v39  ;;  %1828 = vpow2.f32 %v1086_v59  ;;  %v2899_v39 = vld [vmem:[#allocation16_spill] sm:$0xff] }
 0x316   : > { %v2495_v51 = vpop.eup %1808  ;;  %v999_v27 = vsub.f32 %v2267_v34, %v907_v44  ;;  %1830 = vpow2.f32 %v1064_v32 }
 0x317   : > { %966 = vmax.xlane.f32.xlu0 %v965_v6  ;;  %v2498_v50 = vpop.eup %1810  ;;  %v998_v6 = vsub.f32 %v2265_v33, %v907_v44  ;;  %v901_v61 = vpop.xlane.xlu0 %900  ;;  %v1217_v21 = vadd.f32 %v2495_v51, %v2490_v63  ;;  %v1056_v28 = vmul.f32 1.442695, %v992_v3  ;;  %1832 = vpow2.f32 %v1066_v46  ;;  %v2898_v44 = vld [vmem:[#allocation17_spill] sm:$0xff]  ;;  %v2900_v3 = vld [vmem:[#allocation19_spill] sm:$0xff]  ;;  %v2901_v46 = vld [vmem:[#allocation18_spill] sm:$0xff] }
 0x318   : > { %v2503_v4 = vpop.eup %1812  ;;  %v1058_v55 = vmul.f32 1.442695, %v993_v0  ;;  %1834 = vpow2.f32 %v1076_v48  ;;  %v994_v33 = vsub.f32 %v2257_v29, %v901_v61  ;;  %v1070_v34 = vmul.f32 1.442695, %v999_v27 }
 0x319   : > { %957 = vmax.xlane.f32.xlu1 %v956_v24  ;;  %v1208_v24 = vadd.f32 %v2503_v4, %v2498_v50  ;;  %v1068_v18 = vmul.f32 1.442695, %v998_v6  ;;  %v2512_v12 = vpop.eup %1814  ;;  %1836 = vpow2.f32 %v1078_v38  ;;  %v944_v29 = vmax.f32 %v2899_v39, %v2898_v44 }
 0x31a   : > { %v2517_v62 = vpop.eup %1816  ;;  %1838 = vpow2.f32 %v1056_v28  ;;  %v1060_v58 = vmul.f32 1.442695, %v994_v33  ;;  %v947_v0 = vmax.f32 %v2901_v46, %v2900_v3 }
 0x31b   : > { %1224 = vadd.xlane.f32.xlu0 %v1223_v35  ;;  %v995_v35 = vsub.f32 %v2259_v30, %v901_v61  ;;  %v2519_v25 = vpop.eup %1818  ;;  %1840 = vpow2.f32 %v1058_v55  ;;  %v1211_v42 = vadd.f32 %v2517_v62, %v2512_v12 }
 0x31c   : > { %1842 = vpow2.f32 %v1068_v18 }
 0x31d   : > { %1215 = vadd.xlane.f32.xlu1 %v1214_v41  ;;  %v2523_v41 = vpop.eup %1820  ;;  %1844 = vpow2.f32 %v1070_v34  ;;  %v1062_v30 = vmul.f32 1.442695, %v995_v35 }
 0x31e   : > { %v2527_v59 = vpop.eup %1822  ;;  %v1202_v2 = vadd.f32 %v2523_v41, %v2519_v25  ;;  %1846 = vpow2.f32 %v1060_v58 }
 0x31f   : > { %960 = vmax.xlane.f32.xlu0 %v959_v31  ;;  %v2531_v31 = vpop.eup %1824  ;;  %1848 = vpow2.f32 %v1062_v30 }
 0x320   : > { %v1196_v6 = vadd.f32 %v2531_v31, %v2527_v59 }
 0x321   : > { %951 = vmax.xlane.f32.xlu1 %v950_v37  ;;  %v2533_v32 = vpop.eup %1826 }
 0x322   : > { %v2537_v37 = vpop.eup %1828 }
 0x323   : > { %1218 = vadd.xlane.f32.xlu0 %v1217_v21  ;;  %v2539_v48 = vpop.eup %1830  ;;  %v1205_v61 = vadd.f32 %v2537_v37, %v2533_v32 }
 0x324   : > { %2902 = vst [vmem:[#allocation20_spill] sm:$0xff] %v2539_v48  ;;  %v2543_v38 = vpop.eup %1832 }
 0x325   : > { %1209 = vadd.xlane.f32.xlu1 %v1208_v24  ;;  %2903 = vst [vmem:[#allocation17_spill] sm:$0xff] %v2543_v38  ;;  %v2545_v27 = vpop.eup %1834  ;;  %v1190_v55 = vadd.f32 %v2543_v38, %v2539_v48  ;;  %v2911_v38 = vld [vmem:[#allocation25_spill] sm:$0xff] }
 0x326   : > { %v2549_v21 = vpop.eup %1836 }
 0x327   : > { %954 = vmax.xlane.f32.xlu0 %v953_v36  ;;  %v2551_v28 = vpop.eup %1838  ;;  %v1199_v33 = vadd.f32 %v2549_v21, %v2545_v27 }
 0x328   : > { %2904 = vst [vmem:[#allocation16_spill] sm:$0xff] %v2551_v28  ;;  %v2555_v24 = vpop.eup %1840 }
 0x329   : > { %945 = vmax.xlane.f32.xlu1 %v944_v29  ;;  %2905 = vst [vmem:[#allocation19_spill] sm:$0xff] %v2555_v24  ;;  %v2557_v18 = vpop.eup %1842  ;;  %v1184_v36 = vadd.f32 %v2555_v24, %v2551_v28  ;;  %v2909_v28 = vld [vmem:[#allocation28_spill] sm:$0xff] }
 0x32a   : > { %2906 = vst [vmem:[#allocation18_spill] sm:$0xff] %v2557_v18  ;;  %v2561_v34 = vpop.eup %1844 }
 0x32b   : > { %1212 = vadd.xlane.f32.xlu0 %v1211_v42  ;;  %v2567_v30 = vpop.eup %1846  ;;  %v1193_v42 = vadd.f32 %v2561_v34, %v2557_v18 }
 0x32c   : > { %2907 = vst [vmem:[#allocation31_spill] sm:$0xff] %v2567_v30 }
 0x32d   : > { %1203 = vadd.xlane.f32.xlu1 %v1202_v2  ;;  %v2571_v2 = vpop.eup %1848 }
 0x32e   : > { %2908 = vst [vmem:[#allocation32_spill] sm:$0xff] %v2571_v2 }
 0x32f   : > { %948 = vmax.xlane.f32.xlu0 %v947_v0 }
 0x331   : > { %1197 = vadd.xlane.f32.xlu1 %v1196_v6 }
 0x333   : > { %1206 = vadd.xlane.f32.xlu0 %v1205_v61 }
 0x335   : > { %1191 = vadd.xlane.f32.xlu1 %v1190_v55 }
 0x337   : > { %1200 = vadd.xlane.f32.xlu0 %v1199_v33  ;;  %v988_v35 = vpop.xlane.xlu1 %987 }
 0x338   : > { %v1052_v29 = vsub.f32 %v2405_v53, %v988_v35  ;;  %v1053_v58 = vsub.f32 %v2407_v47, %v988_v35 }
 0x339   : > { %1185 = vadd.xlane.f32.xlu1 %v1184_v36  ;;  %v1187_v36 = vadd.f32 %v2571_v2, %v2567_v30  ;;  %v2915_v2 = vld [vmem:[#allocation26_spill] sm:$0xff] }
 0x33a   : > { %v1176_v0 = vmul.f32 1.442695, %v1052_v29  ;;  %v1178_v6 = vmul.f32 1.442695, %v1053_v58 }
 0x33b   : > { %1194 = vadd.xlane.f32.xlu0 %v1193_v42  ;;  %v982_v61 = vpop.xlane.xlu1 %981  ;;  %v991_v55 = vpop.xlane.xlu0 %990 }
 0x33c   : > { %1850 = vpow2.f32 %v1176_v0  ;;  %v1048_v33 = vsub.f32 %v2397_v52, %v982_v61  ;;  %v1049_v53 = vsub.f32 %v2909_v28, %v982_v61  ;;  %v1054_v47 = vsub.f32 %v2411_v43, %v991_v55  ;;  %v2910_v0 = vld [vmem:[#allocation24_spill] sm:$0xff]  ;;  %v2912_v61 = vld [vmem:[#allocation29_spill] sm:$0xff] }
 0x33d   : > { %1852 = vpow2.f32 %v1178_v6  ;;  %v1055_v35 = vsub.f32 %v2415_v11, %v991_v55  ;;  %v2913_v6 = vld [vmem:[#allocation30_spill] sm:$0xff] }
 0x33e   : > { %v1168_v24 = vmul.f32 1.442695, %v1048_v33  ;;  %v1170_v48 = vmul.f32 1.442695, %v1049_v53  ;;  %v1180_v29 = vmul.f32 1.442695, %v1054_v47 }
 0x33f   : > { %v1182_v58 = vmul.f32 1.442695, %v1055_v35  ;;  %1188 = vadd.xlane.f32.xlu0 %v1187_v36  ;;  %v976_v42 = vpop.xlane.xlu1 %975  ;;  %v985_v18 = vpop.xlane.xlu0 %984  ;;  %v2914_v36 = vld [vmem:[#allocation21_spill] sm:$0xff] }
 0x340   : > { %1854 = vpow2.f32 %v1168_v24  ;;  %v1044_v52 = vsub.f32 %v2910_v0, %v976_v42  ;;  %v1045_v28 = vsub.f32 %v2911_v38, %v976_v42  ;;  %v1050_v43 = vsub.f32 %v2912_v61, %v985_v18  ;;  %v2916_v42 = vld [vmem:[#allocation27_spill] sm:$0xff]  ;;  %v2917_v61 = vld [vmem:[#allocation22_spill] sm:$0xff] }
 0x341   : > { %1856 = vpow2.f32 %v1170_v48  ;;  %v1051_v11 = vsub.f32 %v2913_v6, %v985_v18  ;;  %v2918_v6 = vld [vmem:[#allocation23_spill] sm:$0xff] }
 0x342   : > { %1858 = vpow2.f32 %v1180_v29  ;;  %v1160_v55 = vmul.f32 1.442695, %v1044_v52  ;;  %v1162_v30 = vmul.f32 1.442695, %v1045_v28  ;;  %v1172_v33 = vmul.f32 1.442695, %v1050_v43 }
 0x343   : > { %1860 = vpow2.f32 %v1182_v58  ;;  %v1174_v53 = vmul.f32 1.442695, %v1051_v11  ;;  %v970_v47 = vpop.xlane.xlu1 %969  ;;  %v979_v35 = vpop.xlane.xlu0 %978 }
 0x344   : > { %1862 = vpow2.f32 %v1160_v55  ;;  %v1040_v24 = vsub.f32 %v2381_v17, %v970_v47  ;;  %v1041_v0 = vsub.f32 %v2914_v36, %v970_v47  ;;  %v1046_v38 = vsub.f32 %v2915_v2, %v979_v35 }
 0x345   : > { %1864 = vpow2.f32 %v1162_v30  ;;  %v1047_v48 = vsub.f32 %v2916_v42, %v979_v35 }
 0x346   : > { %1866 = vpow2.f32 %v1172_v33  ;;  %v1152_v18 = vmul.f32 1.442695, %v1040_v24  ;;  %v1154_v29 = vmul.f32 1.442695, %v1041_v0  ;;  %v1164_v52 = vmul.f32 1.442695, %v1046_v38 }
 0x347   : > { %1868 = vpow2.f32 %v1174_v53  ;;  %v1166_v28 = vmul.f32 1.442695, %v1047_v48  ;;  %v973_v58 = vpop.xlane.xlu0 %972 }
 0x348   : > { %1870 = vpow2.f32 %v1152_v18  ;;  %v1042_v43 = vsub.f32 %v2917_v61, %v973_v58  ;;  %v1043_v11 = vsub.f32 %v2918_v6, %v973_v58 }
 0x349   : > { %v2589_v17 = vpop.eup %1850  ;;  %1872 = vpow2.f32 %v1154_v29 }
 0x34a   : > { %v2591_v55 = vpop.eup %1852  ;;  %1874 = vpow2.f32 %v1164_v52  ;;  %v1156_v30 = vmul.f32 1.442695, %v1042_v43  ;;  %v1158_v2 = vmul.f32 1.442695, %v1043_v11 }
 0x34b   : > { %1876 = vpow2.f32 %v1166_v28  ;;  %v1274_v33 = vadd.f32 %v2591_v55, %v2589_v17 }
 0x34c   : > { %1878 = vpow2.f32 %v1156_v30 }
 0x34d   : > { %v2595_v53 = vpop.eup %1854  ;;  %1880 = vpow2.f32 %v1158_v2  ;;  %1275 = vadd.xlane.f32.xlu1 %v1274_v33 }
 0x34e   : > { %v2597_v47 = vpop.eup %1856 }
 0x34f   : > { %v2599_v35 = vpop.eup %1858  ;;  %v1268_v24 = vadd.f32 %v2597_v47, %v2595_v53 }
 0x350   : > { %v2603_v36 = vpop.eup %1860 }
 0x351   : > { %v2605_v0 = vpop.eup %1862  ;;  %1269 = vadd.xlane.f32.xlu1 %v1268_v24  ;;  %v1277_v38 = vadd.f32 %v2603_v36, %v2599_v35 }
 0x352   : > { %2919 = vst [vmem:[#allocation28_spill] sm:$0xff] %v2605_v0  ;;  %v2609_v42 = vpop.eup %1864 }
 0x353   : > { %2920 = vst [vmem:[#allocation24_spill] sm:$0xff] %v2609_v42  ;;  %v2611_v48 = vpop.eup %1866  ;;  %1278 = vadd.xlane.f32.xlu0 %v1277_v38  ;;  %v1262_v18 = vadd.f32 %v2609_v42, %v2605_v0 }
 0x354   : > { %v2615_v29 = vpop.eup %1868 }
 0x355   : > { %v2617_v52 = vpop.eup %1870  ;;  %1263 = vadd.xlane.f32.xlu1 %v1262_v18  ;;  %v1271_v28 = vadd.f32 %v2615_v29, %v2611_v48 }
 0x356   : > { %2921 = vst [vmem:[#allocation25_spill] sm:$0xff] %v2617_v52  ;;  %v2621_v58 = vpop.eup %1872 }
 0x357   : > { %2922 = vst [vmem:[#allocation29_spill] sm:$0xff] %v2621_v58  ;;  %v2623_v61 = vpop.eup %1874  ;;  %1272 = vadd.xlane.f32.xlu0 %v1271_v28  ;;  %v1256_v43 = vadd.f32 %v2621_v58, %v2617_v52 }
 0x358   : > { %2923 = vst [vmem:[#allocation30_spill] sm:$0xff] %v2623_v61  ;;  %v2627_v6 = vpop.eup %1876 }
 0x359   : > { %v2629_v11 = vpop.eup %1878  ;;  %1257 = vadd.xlane.f32.xlu1 %v1256_v43  ;;  %v1265_v30 = vadd.f32 %v2627_v6, %v2623_v61 }
 0x35a   : > { %2924 = vst [vmem:[#allocation21_spill] sm:$0xff] %v2629_v11  ;;  %v2633_v2 = vpop.eup %1880 }
 0x35b   : > { %2925 = vst [vmem:[#allocation26_spill] sm:$0xff] %v2633_v2  ;;  %1266 = vadd.xlane.f32.xlu0 %v1265_v30  ;;  %v1259_v33 = vadd.f32 %v2633_v2, %v2629_v11 }
 0x35f   : > { %1260 = vadd.xlane.f32.xlu0 %v1259_v33 }
 0x396   : > { %v1228_v24 = vpop.xlane.xlu1 %1227 }
 0x397   : > { %1882 = vrcp.f32 %v1228_v24 }
 0x39a   : > { %v964_v38 = vpop.xlane.xlu1 %963 }
 0x39b   : > { %v1036_v18 = vsub.f32 %v2371_v8, %v964_v38  ;;  %v1037_v28 = vsub.f32 %v2373_v9, %v964_v38 }
 0x39c   : > { %v1231_v52 = vpop.xlane.xlu0 %1230 }
 0x39d   : > { %v1144_v58 = vmul.f32 1.442695, %v1036_v18  ;;  %v1146_v43 = vmul.f32 1.442695, %v1037_v28  ;;  %1884 = vrcp.f32 %v1231_v52 }
 0x39e   : > { %v1222_v0 = vpop.xlane.xlu1 %1221 }
 0x39f   : > { %1886 = vpow2.f32 %v1144_v58 }
 0x3a0   : > { %1888 = vpow2.f32 %v1146_v43  ;;  %v967_v61 = vpop.xlane.xlu0 %966 }
 0x3a1   : > { %v1038_v30 = vsub.f32 %v2377_v13, %v967_v61  ;;  %v1039_v11 = vsub.f32 %v2379_v16, %v967_v61  ;;  %1890 = vrcp.f32 %v1222_v0 }
 0x3a2   : > { %v958_v33 = vpop.xlane.xlu1 %957 }
 0x3a3   : > { %v1148_v2 = vmul.f32 1.442695, %v1038_v30  ;;  %v1150_v24 = vmul.f32 1.442695, %v1039_v11  ;;  %v1032_v42 = vsub.f32 %v2355_v22, %v958_v33  ;;  %v1033_v8 = vsub.f32 %v2357_v23, %v958_v33 }
 0x3a4   : > { %v1225_v9 = vpop.xlane.xlu0 %1224  ;;  %v1883_v18 = vpop.eup %1882 }
 0x3a5   : > { %1892 = vpow2.f32 %v1148_v2  ;;  %v1136_v38 = vmul.f32 1.442695, %v1032_v42  ;;  %v1138_v52 = vmul.f32 1.442695, %v1033_v8  ;;  %v1341_v23 = vmul.f32 %v1883_v18, %v2443_v54 }
 0x3a6   : > { %1894 = vpow2.f32 %v1150_v24  ;;  %v1216_v58 = vpop.xlane.xlu1 %1215 }
 0x3a7   : > { %1896 = vpow2.f32 %v1136_v38 }
 0x3a8   : > { %1898 = vpow2.f32 %v1138_v52  ;;  %v961_v13 = vpop.xlane.xlu0 %960 }
 0x3a9   : > { %1900 = vrcp.f32 %v1225_v9  ;;  %v1034_v16 = vsub.f32 %v2363_v26, %v961_v13  ;;  %v1035_v61 = vsub.f32 %v2365_v1, %v961_v13  ;;  %v1340_v26 = vmul.f32 %v1883_v18, %v2440_v7 }
 0x3aa   : > { %v1885_v11 = vpop.eup %1884  ;;  %v952_v22 = vpop.xlane.xlu1 %951  ;;  %1902 = vrcp.f32 %v1216_v58 }
 0x3ab   : > { %v1140_v0 = vmul.f32 1.442695, %v1034_v16  ;;  %v1142_v28 = vmul.f32 1.442695, %v1035_v61  ;;  %v1028_v42 = vsub.f32 %v2339_v14, %v952_v22  ;;  %v1029_v2 = vsub.f32 %v2341_v15, %v952_v22 }
 0x3ac   : > { %v2648_v43 = vpop.eup %1886  ;;  %v1219_v30 = vpop.xlane.xlu0 %1218  ;;  %v1343_v33 = vmul.f32 %v1885_v11, %v2457_v45  ;;  %v1342_v1 = vmul.f32 %v1885_v11, %v2453_v10 }
 0x3ad   : > { %v2653_v24 = vpop.eup %1888  ;;  %1904 = vpow2.f32 %v1140_v0  ;;  %v1128_v54 = vmul.f32 1.442695, %v1028_v42  ;;  %v1130_v8 = vmul.f32 1.442695, %v1029_v2 }
 0x3ae   : > { %1906 = vpow2.f32 %v1142_v28  ;;  %v1391_v9 = vpack.c.bf16 %v1343_v33, %v1341_v23  ;;  %v1210_v14 = vpop.xlane.xlu1 %1209  ;;  %v1390_v38 = vpack.c.bf16 %v1342_v1, %v1340_v26  ;;  %v1250_v15 = vadd.f32 %v2653_v24, %v2648_v43  ;;  %v1891_v7 = vpop.eup %1890 }
 0x3af   : > { %1908 = vpow2.f32 %v1128_v54  ;;  %v1336_v26 = vmul.f32 %v1891_v7, %v2449_v56 }
 0x3b0   : > { %1910 = vpow2.f32 %v1130_v8  ;;  %1428 = vmatprep.subr.bf16.mxu0 %v1391_v9  ;;  %v955_v45 = vpop.xlane.xlu0 %954  ;;  %1251 = vadd.xlane.f32.xlu1 %v1250_v15 }
 0x3b1   : > { %1912 = vrcp.f32 %v1219_v30  ;;  %1429 = vmatpush1.bf16.xpose.msra.mxu0 %v1390_v38  ;;  %v1030_v10 = vsub.f32 %v2897_v57, %v955_v45  ;;  %v1031_v52 = vsub.f32 %v2349_v19, %v955_v45  ;;  %v1337_v30 = vmul.f32 %v1891_v7, %v2451_v49 }
 0x3b2   : > { %v2659_v58 = vpop.eup %1892  ;;  %v946_v18 = vpop.xlane.xlu1 %945  ;;  %1914 = vrcp.f32 %v1210_v14 }
 0x3b3   : > { %v2661_v13 = vpop.eup %1894  ;;  %v1132_v16 = vmul.f32 1.442695, %v1030_v10  ;;  %v1134_v61 = vmul.f32 1.442695, %v1031_v52  ;;  %v1024_v11 = vsub.f32 %v2899_v39, %v946_v18  ;;  %v1025_v22 = vsub.f32 %v2898_v44, %v946_v18 }
 0x3b4   : > { %v2665_v23 = vpop.eup %1896  ;;  %v1213_v0 = vpop.xlane.xlu0 %1212  ;;  %v1253_v57 = vadd.f32 %v2661_v13, %v2659_v58 }
 0x3b5   : > { %v2669_v28 = vpop.eup %1898  ;;  %1916 = vpow2.f32 %v1132_v16  ;;  %v1120_v19 = vmul.f32 1.442695, %v1024_v11  ;;  %v1122_v42 = vmul.f32 1.442695, %v1025_v22 }
 0x3b6   : > { %v1901_v2 = vpop.eup %1900  ;;  %1918 = vpow2.f32 %v1134_v61  ;;  %1254 = vadd.xlane.f32.xlu0 %v1253_v57  ;;  %v1204_v39 = vpop.xlane.xlu1 %1203  ;;  %v1244_v44 = vadd.f32 %v2669_v28, %v2665_v23 }
 0x3b7   : > { %1920 = vpow2.f32 %v1120_v19  ;;  %v1339_v33 = vmul.f32 %v1901_v2, %v2471_v60  ;;  %v1338_v1 = vmul.f32 %v1901_v2, %v2467_v20  ;;  %v1903_v8 = vpop.eup %1902 }
 0x3b8   : > { %1922 = vpow2.f32 %v1122_v42  ;;  %v949_v54 = vpop.xlane.xlu0 %948  ;;  %1245 = vadd.xlane.f32.xlu1 %v1244_v44  ;;  %v1332_v11 = vmul.f32 %v1903_v8, %v2474_v40 }
 0x3b9   : > { %1924 = vrcp.f32 %v1213_v0  ;;  %v1389_v9 = vpack.c.bf16 %v1339_v33, %v1337_v30  ;;  %v1388_v14 = vpack.c.bf16 %v1338_v1, %v1336_v26  ;;  %v1026_v49 = vsub.f32 %v2901_v46, %v949_v54 }
 0x3ba   : > { %v2678_v38 = vpop.eup %1904  ;;  %v1027_v15 = vsub.f32 %v2900_v3, %v949_v54  ;;  %v1198_v45 = vpop.xlane.xlu1 %1197  ;;  %1926 = vrcp.f32 %v1204_v39  ;;  %v1333_v3 = vmul.f32 %v1903_v8, %v2479_v5 }
 0x3bb   : > { %v2681_v10 = vpop.eup %1906  ;;  %1430 = vmatprep.subr.bf16.mxu0 %v1389_v9  ;;  %v1124_v56 = vmul.f32 1.442695, %v1026_v49  ;;  %1928 = vrcp.f32 %v1198_v45 }
 0x3bc   : > { %v2683_v20 = vpop.eup %1908  ;;  %1431 = vmatpush1.bf16.xpose.msra.mxu0 %v1388_v14  ;;  %v1126_v60 = vmul.f32 1.442695, %v1027_v15  ;;  %v1207_v7 = vpop.xlane.xlu0 %1206  ;;  %v1247_v52 = vadd.f32 %v2681_v10, %v2678_v38 }
 0x3bd   : > { %v2687_v46 = vpop.eup %1910  ;;  %1930 = vpow2.f32 %v1124_v56 }
 0x3be   : > { %v1913_v18 = vpop.eup %1912  ;;  %1932 = vpow2.f32 %v1126_v60  ;;  %1248 = vadd.xlane.f32.xlu0 %v1247_v52  ;;  %v1238_v16 = vadd.f32 %v2687_v46, %v2683_v20  ;;  %v1192_v44 = vpop.xlane.xlu1 %1191 }
 0x3bf   : > { %1934 = vrcp.f32 %v1207_v7  ;;  %v1335_v61 = vmul.f32 %v1913_v18, %v2495_v51  ;;  %v1334_v22 = vmul.f32 %v1913_v18, %v2490_v63  ;;  %v1915_v57 = vpop.eup %1914 }
 0x3c0   : > { %v1201_v0 = vpop.xlane.xlu0 %1200  ;;  %1239 = vadd.xlane.f32.xlu1 %v1238_v16  ;;  %v1329_v33 = vmul.f32 %v1915_v57, %v2503_v4  ;;  %v1328_v54 = vmul.f32 %v1915_v57, %v2498_v50 }
 0x3c1   : > { %v1387_v19 = vpack.c.bf16 %v1335_v61, %v1333_v3  ;;  %v1386_v42 = vpack.c.bf16 %v1334_v22, %v1332_v11  ;;  %1936 = vrcp.f32 %v1201_v0 }
 0x3c2   : > { %v2695_v2 = vpop.eup %1916  ;;  %v1186_v18 = vpop.xlane.xlu1 %1185 }
 0x3c3   : > { %v2697_v30 = vpop.eup %1918  ;;  %1432 = vmatprep.subr.bf16.mxu0 %v1387_v19 }
 0x3c4   : > { %v2699_v5 = vpop.eup %1920  ;;  %1433 = vmatpush1.bf16.xpose.msra.mxu0 %v1386_v42  ;;  %v1195_v39 = vpop.xlane.xlu0 %1194  ;;  %v1241_v40 = vadd.f32 %v2697_v30, %v2695_v2 }
 0x3c5   : > { %v2703_v51 = vpop.eup %1922  ;;  %1938 = vrcp.f32 %v1195_v39 }
 0x3c6   : > { %v1925_v63 = vpop.eup %1924  ;;  %1242 = vadd.xlane.f32.xlu0 %v1241_v40  ;;  %v1232_v26 = vadd.f32 %v2703_v51, %v2699_v5  ;;  %1940 = vrcp.f32 %v1192_v44  ;;  %v262_v40 = vld [vmem:[%s2839_s2 + $0x30] sm:$0xff] }
 0x3c7   : > { %v1331_v1 = vmul.f32 %v1925_v63, %v2517_v62  ;;  %v1330_v8 = vmul.f32 %v1925_v63, %v2512_v12  ;;  %v1927_v9 = vpop.eup %1926 }
 0x3c8   : > { %1233 = vadd.xlane.f32.xlu1 %v1232_v26  ;;  %v1929_v14 = vpop.eup %1928  ;;  %v1189_v60 = vpop.xlane.xlu0 %1188  ;;  %v1325_v50 = vmul.f32 %v1927_v9, %v2523_v41  ;;  %v1324_v3 = vmul.f32 %v1927_v9, %v2519_v25  ;;  %v260_v25 = vld [vmem:[%s2839_s2 + $0x20] sm:$0xff]  ;;  %v2929_v9 = vld [vmem:[#allocation20_spill] sm:$0xff] }
 0x3c9   : > { %v1385_v49 = vpack.c.bf16 %v1331_v1, %v1329_v33  ;;  %v1384_v15 = vpack.c.bf16 %v1330_v8, %v1328_v54  ;;  %1942 = vrcp.f32 %v1189_v60  ;;  %v1321_v61 = vmul.f32 %v1929_v14, %v2531_v31  ;;  %v2927_v26 = vld [vmem:[#allocation18_spill] sm:$0xff]  ;;  %v263_v1 = vld [vmem:[%s2839_s2 + $0x38] sm:$0xff]  ;;  %v2928_v54 = vld [vmem:[#allocation32_spill] sm:$0xff] }
 0x3ca   : > { %v2711_v45 = vpop.eup %1930  ;;  %1944 = vrcp.f32 %v1186_v18  ;;  %v1320_v31 = vmul.f32 %v1929_v14, %v2527_v59  ;;  %v261_v60 = vld [vmem:[%s2839_s2 + $0x28] sm:$0xff] }
 0x3cb   : > { %v2713_v56 = vpop.eup %1932  ;;  %1434 = vmatprep.subr.bf16.mxu0 %v1385_v49  ;;  %v2931_v18 = vld [vmem:[#allocation31_spill] sm:$0xff] }
 0x3cc   : > { %v1935_v4 = vpop.eup %1934  ;;  %1435 = vmatpush1.bf16.xpose.msra.mxu0 %v1384_v15  ;;  %v1235_v62 = vadd.f32 %v2713_v56, %v2711_v45  ;;  %v2930_v15 = vld [vmem:[#allocation19_spill] sm:$0xff] }
 0x3cd   : > { %v1327_v12 = vmul.f32 %v1935_v4, %v2537_v37  ;;  %v1326_v7 = vmul.f32 %v1935_v4, %v2533_v32 }
 0x3ce   : > { %v1937_v52 = vpop.eup %1936  ;;  %1236 = vadd.xlane.f32.xlu0 %v1235_v62 }
 0x3cf   : > { %v1383_v16 = vpack.c.bf16 %v1327_v12, %v1325_v50  ;;  %v1323_v11 = vmul.f32 %v1937_v52, %v2549_v21  ;;  %v1382_v22 = vpack.c.bf16 %v1326_v7, %v1324_v3  ;;  %v1322_v57 = vmul.f32 %v1937_v52, %v2545_v27  ;;  %v2926_v21 = vld [vmem:[#allocation17_spill] sm:$0xff]  ;;  %v1486_v7 = vld [vmem:[%s2841_s4] sm:$0xf] }
 0x3d1   : > { %1436 = vmatprep.subr.bf16.mxu0 %v1383_v16  ;;  %v1381_v0 = vpack.c.bf16 %v1323_v11, %v1321_v61  ;;  %v1380_v39 = vpack.c.bf16 %v1322_v57, %v1320_v31  ;;  %v2932_v61 = vld [vmem:[#allocation16_spill] sm:$0xff] }
 0x3d2   : > { %v1939_v41 = vpop.eup %1938 }
 0x3d3   : > { %v1941_v37 = vpop.eup %1940  ;;  %v1319_v19 = vmul.f32 %v1939_v41, %v2561_v34  ;;  %v1318_v59 = vmul.f32 %v1939_v41, %v2927_v26 }
 0x3d4   : > { %1437 = vmatpush1.bf16.xpose.msra.mxu0 %v1382_v22  ;;  %v1317_v42 = vmul.f32 %v1941_v37, %v2926_v21  ;;  %v1316_v14 = vmul.f32 %v1941_v37, %v2929_v9 }
 0x3d5   : > { %1438 = vmatprep.subr.bf16.mxu0 %v1381_v0 }
 0x3d6   : > { %v1276_v32 = vpop.xlane.xlu1 %1275  ;;  %v1379_v63 = vpack.c.bf16 %v1319_v19, %v1317_v42  ;;  %v1943_v44 = vpop.eup %1942  ;;  %v1378_v62 = vpack.c.bf16 %v1318_v59, %v1316_v14  ;;  %v2936_v14 = vld [vmem:[#allocation28_spill] sm:$0xff] }
 0x3d7   : > { %1946 = vrcp.f32 %v1276_v32  ;;  %v1945_v34 = vpop.eup %1944  ;;  %v1315_v8 = vmul.f32 %v1943_v44, %v2928_v54  ;;  %v1314_v3 = vmul.f32 %v1943_v44, %v2931_v18 }
 0x3d8   : > { %v1313_v4 = vmul.f32 %v1945_v34, %v2930_v15  ;;  %v1312_v11 = vmul.f32 %v1945_v34, %v2932_v61  ;;  %v2937_v15 = vld [vmem:[#allocation29_spill] sm:$0xff] }
 0x3d9   : > { %290 = vperm.xlu1 %1779, %v260_v25  }
 0x3da   : > { %v1270_v27 = vpop.xlane.xlu1 %1269  ;;  %v1377_v50 = vpack.c.bf16 %v1315_v8, %v1313_v4  ;;  %v1376_v0 = vpack.c.bf16 %v1314_v3, %v1312_v11  ;;  %v2935_v8 = vld [vmem:[#allocation26_spill] sm:$0xff] }
 0x3dc   : > { %1439 = vmatpush1.bf16.xpose.msra.mxu0 %v1380_v39  ;;  %v1279_v33 = vpop.xlane.xlu0 %1278 }
 0x3dd   : > { %1440 = vmatprep.subr.bf16.mxu0 %v1379_v63  ;;  %1948 = vrcp.f32 %v1279_v33  ;;  %300 = vperm.xlu1 %1779, %v262_v40  }
 0x3de   : > { %1950 = vrcp.f32 %v1270_v27  ;;  %v1264_v52 = vpop.xlane.xlu1 %1263 }
 0x3e0   : > { %v1273_v49 = vpop.xlane.xlu0 %1272 }
 0x3e1   : > { %1952 = vrcp.f32 %v1273_v49  ;;  %305 = vperm.xlu1 %1779, %v263_v1   ;;  %v2934_v1 = vld [vmem:[#allocation30_spill] sm:$0xff] }
 0x3e2   : > { %v1258_v21 = vpop.xlane.xlu1 %1257 }
 0x3e4   : > { %1441 = vmatpush1.bf16.xpose.msra.mxu0 %v1378_v62  ;;  %295 = vperm.xlu0 %1778, %v261_v60   ;;  %v1267_v12 = vpop.xlane.xlu0 %1266  ;;  %v1947_v16 = vpop.eup %1946  ;;  %v2939_v62 = vld [vmem:[#allocation25_spill] sm:$0xff] }
 0x3e5   : > { %1442 = vmatprep.subr.bf16.mxu0 %v1377_v50  ;;  %1954 = vrcp.f32 %v1267_v12  ;;  %v1373_v41 = vmul.f32 %v1947_v16, %v2591_v55  ;;  %v1372_v42 = vmul.f32 %v1947_v16, %v2589_v17  ;;  %v2933_v17 = vld [vmem:[#allocation24_spill] sm:$0xff] }
 0x3e6   : > { %1956 = vrcp.f32 %v1264_v52 }
 0x3e8   : > { %1489 = vperm.xlu0 %1778, %v1486_v7   ;;  %v1261_v57 = vpop.xlane.xlu0 %1260 }
 0x3e9   : > { %1958 = vrcp.f32 %v1261_v57 }
 0x3ea   : > { %v1949_v22 = vpop.eup %1948  ;;  %1960 = vrcp.f32 %v1258_v21 }
 0x3eb   : > { %v1375_v37 = vmul.f32 %v1949_v22, %v2603_v36  ;;  %v1951_v32 = vpop.eup %1950  ;;  %v1374_v25 = vmul.f32 %v1949_v22, %v2599_v35 }
 0x3ec   : > { %1443 = vmatpush1.bf16.xpose.msra.mxu0 %v1376_v0  ;;  %v1369_v39 = vmul.f32 %v1951_v32, %v2597_v47  ;;  %v1368_v33 = vmul.f32 %v1951_v32, %v2595_v53  ;;  %v2938_v53 = vld [vmem:[#allocation21_spill] sm:$0xff] }
 0x3ed   : > { %v1407_v19 = vpack.c.bf16 %v1375_v37, %v1373_v41  ;;  %v1406_v63 = vpack.c.bf16 %v1374_v25, %v1372_v42 }
 0x3ee   : > { %v1953_v31 = vpop.eup %1952 }
 0x3ef   : > { %1444 = vmatprep.subr.bf16.mxu0 %v1407_v19  ;;  %v1371_v40 = vmul.f32 %v1953_v31, %v2615_v29  ;;  %v1370_v35 = vmul.f32 %v1953_v31, %v2611_v48 }
 0x3f1   : > { %v1405_v55 = vpack.c.bf16 %v1371_v40, %v1369_v39  ;;  %v1404_v26 = vpack.c.bf16 %v1370_v35, %v1368_v33  ;;  %v2941_v33 = vld [vmem:[#allocation11_spill] sm:$0xff] }
 0x3f2   : > { %v1955_v36 = vpop.eup %1954 }
 0x3f3   : > { %v1957_v44 = vpop.eup %1956  ;;  %v1367_v27 = vmul.f32 %v1955_v36, %v2627_v6  ;;  %v1366_v54 = vmul.f32 %v1955_v36, %v2934_v1 }
 0x3f4   : > { %1445 = vmatpush2.bf16.xpose.msra.mxu0 %v1406_v63  ;;  %v1365_v34 = vmul.f32 %v1957_v44, %v2933_v17  ;;  %v1364_v49 = vmul.f32 %v1957_v44, %v2936_v14  ;;  %v2942_v14 = vld [vmem:[#allocation10_spill] sm:$0xff] }
 0x3f5   : > { %1446 = vmatprep.subr.bf16.mxu0 %v1405_v55 }
 0x3f6   : > { %v1403_v59 = vpack.c.bf16 %v1367_v27, %v1365_v34  ;;  %v1959_v47 = vpop.eup %1958  ;;  %v1402_v4 = vpack.c.bf16 %v1366_v54, %v1364_v49  ;;  %v2940_v27 = vld [vmem:[#allocation9_spill] sm:$0xff] }
 0x3f7   : > { %v1961_v29 = vpop.eup %1960  ;;  %v1363_v9 = vmul.f32 %v1959_v47, %v2935_v8  ;;  %v1362_v60 = vmul.f32 %v1959_v47, %v2938_v53  ;;  %v2945_v53 = vld [vmem:[#allocation13_spill] sm:$0xff] }
 0x3f8   : > { %v1361_v48 = vmul.f32 %v1961_v29, %v2937_v15  ;;  %v1360_v50 = vmul.f32 %v1961_v29, %v2939_v62  ;;  %v2943_v15 = vld [vmem:[#allocation15_spill] sm:$0xff] }
 0x3fa   : > { %v1401_v6 = vpack.c.bf16 %v1363_v9, %v1361_v48  ;;  %v1400_v12 = vpack.c.bf16 %v1362_v60, %v1360_v50 }
 0x3fc   : > { %1447 = vmatpush2.bf16.xpose.msra.mxu0 %v1404_v26 }
 0x3fd   : > { %1448 = vmatprep.subr.bf16.mxu0 %v1403_v59 }
 0x404   : > { %1449 = vmatpush2.bf16.xpose.msra.mxu0 %v1402_v4  ;;  %v2944_v4 = vld [vmem:[#allocation8_spill] sm:$0xff] }
 0x405   : > { %1450 = vmatprep.subr.bf16.mxu0 %v1401_v6 }
 0x40c   : > { %1451 = vmatpush2.bf16.xpose.msra.mxu0 %v1400_v12 }
 0x439   : > { %v1252_v7 = vpop.xlane.xlu1 %1251 }
 0x43a   : > { %1962 = vrcp.f32 %v1252_v7 }
 0x43f   : > { %v1255_v52 = vpop.xlane.xlu0 %1254 }
 0x440   : > { %1964 = vrcp.f32 %v1255_v52 }
 0x441   : > { %v1246_v18 = vpop.xlane.xlu1 %1245 }
 0x442   : > { %1966 = vrcp.f32 %v1246_v18 }
 0x447   : > { %v1249_v3 = vpop.xlane.xlu0 %1248  ;;  %v1963_v16 = vpop.eup %1962 }
 0x448   : > { %1968 = vrcp.f32 %v1249_v3  ;;  %v1357_v22 = vmul.f32 %v1963_v16, %v2653_v24  ;;  %v1356_v41 = vmul.f32 %v1963_v16, %v2648_v43 }
 0x449   : > { %v1240_v61 = vpop.xlane.xlu1 %1239 }
 0x44a   : > { %1970 = vrcp.f32 %v1240_v61 }
 0x44d   : > { %v1965_v11 = vpop.eup %1964 }
 0x44e   : > { %v1359_v0 = vmul.f32 %v1965_v11, %v2661_v13  ;;  %v1358_v37 = vmul.f32 %v1965_v11, %v2659_v58 }
 0x44f   : > { %v1243_v32 = vpop.xlane.xlu0 %1242  ;;  %v1967_v19 = vpop.eup %1966 }
 0x450   : > { %1972 = vrcp.f32 %v1243_v32  ;;  %v1399_v57 = vpack.c.bf16 %v1359_v0, %v1357_v22  ;;  %v1398_v25 = vpack.c.bf16 %v1358_v37, %v1356_v41  ;;  %v1353_v42 = vmul.f32 %v1967_v19, %v2669_v28 }
 0x451   : > { %v1234_v31 = vpop.xlane.xlu1 %1233  ;;  %v1352_v13 = vmul.f32 %v1967_v19, %v2665_v23 }
 0x452   : > { %1452 = vmatprep.subr.bf16.mxu0 %v1399_v57  ;;  %1974 = vrcp.f32 %v1234_v31  ;;  %v1485_v57 = vld [vmem:[%s2840_s3] sm:$0x3] }
 0x453   : > { %1453 = vmatpush2.bf16.xpose.msra.mxu0 %v1398_v25 }
 0x455   : > { %v1969_v21 = vpop.eup %1968  ;;  %v291_v36 = vpop.permute.xlu1 %290 }
 0x456   : > { %v1355_v24 = vmul.f32 %v1969_v21, %v2681_v10  ;;  %v1354_v43 = vmul.f32 %v1969_v21, %v2678_v38  ;;  %v450_v38 = vadd.f32 %v2940_v27, %v291_v36  ;;  %v448_v6 = vadd.f32 %v2944_v4, %v291_v36 }
 0x457   : > { %v1237_v58 = vpop.xlane.xlu0 %1236  ;;  %v1971_v63 = vpop.eup %1970 }
 0x458   : > { %1976 = vrcp.f32 %v1237_v58  ;;  %v1397_v39 = vpack.c.bf16 %v1355_v24, %v1353_v42  ;;  %v1396_v40 = vpack.c.bf16 %v1354_v43, %v1352_v13  ;;  %v1349_v10 = vmul.f32 %v1971_v63, %v2687_v46 }
 0x459   : > { %v1348_v23 = vmul.f32 %v1971_v63, %v2683_v20 }
 0x45a   : > { %1454 = vmatprep.subr.bf16.mxu0 %v1397_v39 }
 0x45b   : > { %1455 = vmatpush2.bf16.xpose.msra.mxu0 %v1396_v40 }
 0x45d   : > { %v1973_v55 = vpop.eup %1972 }
 0x45e   : > { %v1351_v44 = vmul.f32 %v1973_v55, %v2697_v30  ;;  %v1350_v28 = vmul.f32 %v1973_v55, %v2695_v2  ;;  %v301_v30 = vpop.permute.xlu1 %300 }
 0x45f   : > { %v296_v35 = vpop.permute.xlu0 %295  ;;  %v1975_v47 = vpop.eup %1974  ;;  %v460_v60 = vadd.f32 %v2945_v53, %v301_v30 }
 0x460   : > { %v454_v17 = vadd.f32 %v2941_v33, %v296_v35  ;;  %v1395_v34 = vpack.c.bf16 %v1351_v44, %v1349_v10  ;;  %v1394_v26 = vpack.c.bf16 %v1350_v28, %v1348_v23  ;;  %v1345_v2 = vmul.f32 %v1975_v47, %v2703_v51 }
 0x461   : > { %v1344_v46 = vmul.f32 %v1975_v47, %v2699_v5  ;;  %v452_v49 = vadd.f32 %v2942_v14, %v296_v35  ;;  %v2946_v5 = vld [vmem:[#allocation14_spill] sm:$0xff] }
 0x462   : > { %v1719_v59 = vpack.c.bf16 %v454_v17, %v450_v38  ;;  %1456 = vmatprep.subr.bf16.mxu0 %v1395_v34  ;;  %v306_v9 = vpop.permute.xlu1 %305 }
 0x463   : > { %1457 = vmatpush2.bf16.xpose.msra.mxu0 %v1394_v26  ;;  %v464_v48 = vadd.f32 %v2943_v15, %v306_v9  ;;  %v1718_v51 = vpack.c.bf16 %v452_v49, %v448_v6  ;;  %v1490_v19 = vpop.permute.xlu0 %1489 }
 0x464   : > { %1460 = vmatprep.mubr.bf16.mxu0 %v1719_v59 }
 0x465   : > { %v1977_v29 = vpop.eup %1976  ;;  %v1721_v62 = vpack.c.bf16 %v464_v48, %v460_v60 }
 0x466   : > { %v1347_v1 = vmul.f32 %v1977_v29, %v2713_v56  ;;  %v1346_v20 = vmul.f32 %v1977_v29, %v2711_v45  ;;  %v462_v56 = vadd.f32 %v2946_v5, %v306_v9  ;;  %v2947_v45 = vld [vmem:[#allocation12_spill] sm:$0xff] }
 0x467   : > { %v458_v50 = vadd.f32 %v2947_v45, %v301_v30 }
 0x468   : > { %v1393_v54 = vpack.c.bf16 %v1347_v1, %v1345_v2  ;;  %v1392_v8 = vpack.c.bf16 %v1346_v20, %v1344_v46 }
 0x469   : > { %v1720_v12 = vpack.c.bf16 %v462_v56, %v458_v50 }
 0x46a   : > { %1458 = vmatprep.subr.bf16.mxu0 %v1393_v54 }
 0x46b   : > { %1459 = vmatpush2.bf16.xpose.msra.mxu0 %v1392_v8 }
 0x472   : > { %1461 = vmatmul.mubr.bf16.vlgmr.msra.gmra.mxu0 %v1718_v51 }
 0x473   : > { %1470 = vmatprep.mubr.bf16.mxu0 %v1721_v62 }
 0x47a   : > { %1471 = vmatmul.mubr.bf16.gmra.mxu0 %v1720_v12 }
 0x532   : > { %v1462_v7 = vpop.f32.mrf.mxu0 }
 0x534   : > { %v1464_v52 = vpop.f32.mrf.mxu0 }
 0x536   : > { %v1466_v18 = vpop.f32.mrf.mxu0 }
 0x537   : > { %v1481_v32 = vpack.c.bf16 %v1466_v18, %v1462_v7 }
 0x538   : > { %v1468_v3 = vpop.f32.mrf.mxu0 }
 0x539   : > { %v1482_v37 = vpack.c.bf16 %v1468_v3, %v1464_v52 }
 0x53a   : > { %v1472_v16 = vpop.f32.mrf.mxu0 }
 0x53c   : > { %v1474_v61 = vpop.f32.mrf.mxu0 }
 0x53e   : > { %v1476_v11 = vpop.f32.mrf.mxu0 }
 0x53f   : > { %v1483_v41 = vpack.c.bf16 %v1476_v11, %v1472_v16 }
 0x540   : > { %v1478_v22 = vpop.f32.mrf.mxu0 }
 0x541   : > { %v1484_v0 = vpack.c.bf16 %v1478_v22, %v1474_v61 }
 0x543   : > { %1507 = vmatprep.subr.bf16.mxu1 %v1484_v0 }
 0x544   : > { %1508 = vmatpush1.bf16.msra.mxu1 %v1483_v41 }
 0x545   : > { %1509 = vmatprep.subr.bf16.mxu1 %v1482_v37 }
 0x548   : > { %1510 = vmatpush1.bf16.msra.mxu1 %v1481_v32 }
 0x54b   : > { %1690 = vmatmul.mubr.msk.bf16.vlgmr.msra.gmra.mxu1 %vm654_vm2, %v1485_v57 }
 0x60b   : > { %v1529_v25 = vpop.f32.mrf.mxu1 }
 0x60c   : > { %v1530_v21 = vadd.f32 %v1529_v25, %v1490_v19 }
 0x60d   : > { %v1531_v31 = vpop.f32.mrf.mxu1 }
 0x60e   : > { %v1532_v42 = vadd.f32 %v1531_v31, %v1490_v19 }
 0x60f   : > { %v1533_v24 = vpop.f32.mrf.mxu1 }
 0x610   : > { %v1538_v13 = vcombine.low %v1530_v21, %v1532_v42 }
 0x611   : > { %v1534_v43 = vpop.f32.mrf.mxu1 }
 0x612   : > { %1540 = vst [vmem:[%s231_s10] sm:$0xff] %v1538_v13 }
 0x613   : > { %1991 = shalt.err (!%p1988_p5)
}
 0x614   : > { %s1992_s25 = scalar_lea.hbm %s2797_s14, 128  ;;  %s1996_s7 = scalar_lea.hbm %s2842_s5, 256 }
 0x615   : > { %p1993_p6 = scmp.ne.s32.totalorder %s2797_s14, %s1992_s25  ;;  %p1997_p10 = scmp.lt.s32.totalorder %s2797_s14, %s2842_s5 }
 0x616   : > { %p1998_p11 = scmp.lt.s32.totalorder %s1996_s7, %s1992_s25 }
 0x617   : > { %p1994_p7 = pnand %p1993_p6, %p2128_p4 }
 0x618   : > { %p1999_p12 = por %p1998_p11, %p1997_p10 }
 0x619   : > { %p1995_p9 = pneg %p1994_p7 }
 0x61b   : > { %p2000_p13 = pnand %p1999_p12, %p1995_p9 }
 0x61d   : > { %2003 = shalt.err (!%p2000_p13)
}
 0x61e   : > { %1722 = dma.vmem_to_hbm [thread:$0]  (%p2128_p4), %s1559_s11, 128, %s2797_s14, %s1542_s15  }
 0x61f PF: > { %p1728_p0 = scmp.ge.s32.totalorder %s2054_s23, 2  ;;  %s1570_s10 = sand.u32 1, %s2034_s18  }
 0x620   : > { %s1571_s12 = scalar_lea.sflag [#allocation6], %s1570_s10 }
 0x621   : > { %p1725_p1 = pnand %p1728_p0, %p2135_p8 }
 0x623   : > { %p1726_p2 = pneg %p1725_p1 }
 0x625   : > { %2029 = dma.done.wait (%p1726_p2), %s1571_s12, 128  }
 0x626   : > { %2031 = vsyncadd (%p1726_p2), %s1571_s12, 4294967168  ;;  %s18_s23 = sadd.s32 1, %s2054_s23   ;;  %s2948_s18 = smov %s2038_s19 }
 0x627   : > { %p15_p3 = scmp.ge.s32.totalorder %s18_s23, 4   ;;  %s2949_s19 = smov %s2042_s20 }
 0x628   : > { %s2950_s20 = smov %s2141_s6  ;;  %s2951_s21 = smov %s2050_s22 }
 0x629   : > { %s2952_s22 = smov %s2954_s26  ;;  %17 = sbr.rel (!%p15_p3) target bundleno = 4 (0x4), region = 79 }
 0x62e   :  { %1576 = vsyncpa [#allocation6], 1 }
 0x62f   :  { %1578 = vsyncpa [#allocation6 + $0x1], 1 }

</bundles_post_ra>
